<compile_context>
chip_gen: v7x
topology: tpu7x:2x2x1
jax: 0.10.0
libtpu: 0.0.40
codegen_flags: <defaults>
</compile_context>

<pallas_src>
import functools
from math import sqrt

import jax
import jax.numpy as jnp
from jax import lax
from jax.experimental import pallas as pl
from jax.experimental.pallas import tpu as pltpu


def transformer_enc_kernel(x_q_ref, x_kv_ref,
                           ln1_w_ref, ln1_b_ref,
                           wq_ref, bq_ref, wkv_ref, bkv_ref,
                           wo_ref, bo_ref,
                           ln2_w_ref, ln2_b_ref,
                           w1_ref, b1_ref, w2_ref, b2_ref,
                           out_ref,
                           heads_ref,
                           *, num_heads, use_bf16):
    Tq = x_q_ref.shape[1]                       # query-tile rows
    L = x_kv_ref.shape[1]                       # full sequence (keys/values)
    D = x_q_ref.shape[2]                        # d_model
    hd = D // num_heads
    cdt = jnp.bfloat16 if use_bf16 else jnp.float32

    def mm(a, b):                               # a @ b, f32 accumulate
        return jnp.dot(a.astype(cdt), b.astype(cdt),
                       preferred_element_type=jnp.float32)

    def mm_nt(a, b):                            # a @ b.T, no XLU transpose
        return lax.dot_general(a.astype(cdt), b.astype(cdt),
                               (((1,), (1,)), ((), ())),
                               preferred_element_type=jnp.float32)

    def layernorm(v, w, b):
        mu = jnp.mean(v, axis=-1, keepdims=True)
        var = jnp.mean(jnp.square(v - mu), axis=-1, keepdims=True)
        return (v - mu) * lax.rsqrt(var + 1e-5) * w + b

    x_q = x_q_ref[0]                            # (Tq, D) f32
    x_kv = x_kv_ref[0]                          # (L, D)  f32

    ln1_w = ln1_w_ref[...]
    ln1_b = ln1_b_ref[...]

    # ---- LayerNorm 1 + QKV projections ----
    xn_q = layernorm(x_q, ln1_w, ln1_b)
    xn_kv = layernorm(x_kv, ln1_w, ln1_b)
    # wq columns are head-major and already carry the 1/sqrt(d_model) scale.
    q_all = mm(xn_q, wq_ref[...]) + bq_ref[...]          # (Tq, D)
    kv = mm(xn_kv, wkv_ref[...]) + bkv_ref[...]          # (L, 2D) = [K | V]

    # ---- Multi-head attention: per-head context -> VMEM scratch columns ----
    for h in range(num_heads):
        c = h * hd
        qh = q_all[:, c:c + hd]                          # pre-scaled Q
        kh = kv[:, c:c + hd]
        vh = kv[:, D + c:D + c + hd]
        s = mm_nt(qh, kh)                                # (Tq, L) scores
        s = s - jnp.max(s, axis=-1, keepdims=True)
        p = jnp.exp(s)
        p = p * pl.reciprocal(jnp.sum(p, axis=-1, keepdims=True), approx=True)
        heads_ref[:, c:c + hd] = mm(p, vh)               # (Tq, hd) context

    # Single full-depth (K = D) output projection.
    msa = mm(heads_ref[...], wo_ref[...]) + bo_ref[...]
    # dropout(p=0.1) is identity in eval mode
    x1 = msa + x_q

    # ---- LayerNorm 2 + MLP (exact erf GELU, torch default) ----
    x1n = layernorm(x1, ln2_w_ref[...], ln2_b_ref[...])
    h1 = mm(x1n, w1_ref[...]) + b1_ref[...]
    h1 = 0.5 * h1 * (1.0 + lax.erf(h1 * (1.0 / sqrt(2.0))))
    h2 = mm(h1, w2_ref[...]) + b2_ref[...]

    out_ref[...] = (h2 + x1).reshape(1, Tq, D).astype(out_ref.dtype)


# ------------------------- one-time parameter prep -------------------------
def _head_major_permutation(d_model, num_heads):
    """Interleaved (h, {q,k,v}, j) columns -> head-major [Q | K | V] blocks."""
    hd = d_model // num_heads
    perm = []
    for which in range(3):               # 0 = Q, 1 = K, 2 = V
        for h in range(num_heads):
            base = h * 3 * hd + which * hd
            perm.extend(range(base, base + hd))
    return jnp.asarray(perm, dtype=jnp.int32)


def prepare_params(params, num_heads, use_bf16_matmul=True):
    """One-time host-side massaging: permute QKV columns to head-major,
    fold the 1/sqrt(d_model) attention scale into the Q block, split Q vs KV,
    and cast matmul weights to bf16 (biases/LN params stay f32)."""
    (ln1_w, ln1_b, wqkv, bqkv, wo, bo,
     ln2_w, ln2_b, w1, b1, w2, b2) = params
    D = wqkv.shape[0]
    perm = _head_major_permutation(D, num_heads)
    wqkv_p = wqkv[:, perm]
    bqkv_p = bqkv[:, perm]
    scale = 1.0 / sqrt(D)                      # matches qkv_dot_product (d_model)
    wq, wkv = wqkv_p[:, :D] * scale, wqkv_p[:, D:]
    bq, bkv = bqkv_p[:, :D] * scale, bqkv_p[:, D:]
    wdt = jnp.bfloat16 if use_bf16_matmul else jnp.float32
    cw = lambda w: w.astype(wdt)
    return (ln1_w, ln1_b, cw(wq), bq, cw(wkv), bkv, cw(wo), bo,
            ln2_w, ln2_b, cw(w1), b1, cw(w2), b2)


# ------------------------- tiling helpers -------------------------
def _default_q_tile_target():
    # v7x (64 MiB VMEM) -> smaller q tiles; v5e/v6e (128 MiB) -> larger.
    try:
        vmem = pltpu.get_tpu_info().vmem_capacity_bytes
        return 128 if vmem <= (64 << 20) else 256
    except Exception:
        return 256


def _pick_q_tile(L, target):
    if L <= target:
        return L
    for t in range(target, 7, -1):             # largest divisor of L, %8 == 0
        if L % t == 0 and t % 8 == 0:
            return t
    return L


def _vmem_limit_bytes(Tq, L, D, w_itemsize):
    f32 = 4
    weights = 8 * D * D * w_itemsize           # wq + wkv + wo + w1 + w2
    biases = 16 * D * f32
    io = (L * D + 2 * Tq * D) * f32            # x_kv + x_q + out (per buffer)
    scratch = Tq * D * f32
    temps = (3 * Tq * L + 3 * L * D + 8 * Tq * D) * f32
    est = 2 * (weights + biases + io) + scratch + temps
    return int(min(max(32 << 20, 2 * est), 64 << 20))


# ------------------------- wrapper -------------------------
def transformer_enc(x, prepared_params, num_heads, *, q_tile=None):
    (ln1_w, ln1_b, wq, bq, wkv, bkv, wo, bo,
     ln2_w, ln2_b, w1, b1, w2, b2) = prepared_params
    B, L, D = x.shape
    use_bf16 = (wq.dtype == jnp.bfloat16)

    Tq = q_tile if q_tile is not None else _pick_q_tile(L, _default_q_tile_target())
    assert L % Tq == 0
    n_q = L // Tq

    kernel = functools.partial(transformer_enc_kernel,
                               num_heads=num_heads, use_bf16=use_bf16)

    def rep(shape):                            # replicated (constant) block
        return pl.BlockSpec(shape, lambda b, q: (0, 0))

    in_specs = [
        pl.BlockSpec((1, Tq, D), lambda b, q: (b, q, 0)),   # x (query tile)
        pl.BlockSpec((1, L, D), lambda b, q: (b, 0, 0)),    # x (full seq, K/V)
        rep((1, D)), rep((1, D)),               # ln1 w, b
        rep((D, D)), rep((1, D)),               # wq, bq (head-major, pre-scaled)
        rep((D, 2 * D)), rep((1, 2 * D)),       # wkv, bkv (head-major [K|V])
        rep((D, D)), rep((1, D)),               # msa out W, b
        rep((1, D)), rep((1, D)),               # ln2 w, b
        rep((D, 2 * D)), rep((1, 2 * D)),       # mlp fc1 W, b
        rep((2 * D, D)), rep((1, D)),           # mlp fc2 W, b
    ]

    return pl.pallas_call(
        kernel,
        out_shape=jax.ShapeDtypeStruct((B, L, D), x.dtype),
        grid=(B, n_q),
        in_specs=in_specs,
        out_specs=pl.BlockSpec((1, Tq, D), lambda b, q: (b, q, 0)),
        scratch_shapes=[pltpu.VMEM((Tq, D), jnp.float32)],   # per-head contexts
        compiler_params=pltpu.CompilerParams(
            dimension_semantics=("parallel", "parallel"),
            vmem_limit_bytes=_vmem_limit_bytes(Tq, L, D, wq.dtype.itemsize)),
    )(x, x, ln1_w, ln1_b, wq, bq, wkv, bkv, wo, bo,
      ln2_w, ln2_b, w1, b1, w2, b2)


# ------------------------- pure-JAX reference -------------------------
def transformer_enc_ref(x, params, num_heads):
    (ln1_w, ln1_b, wqkv, bqkv, wo, bo,
     ln2_w, ln2_b, w1, b1, w2, b2) = params
    B, L, D = x.shape
    hd = D // num_heads

    def ln(v, w, b):
        mu = v.mean(-1, keepdims=True)
        var = ((v - mu) ** 2).mean(-1, keepdims=True)
        return (v - mu) / jnp.sqrt(var + 1e-5) * w + b

    xn = ln(x, ln1_w, ln1_b)
    qkv = xn @ wqkv + bqkv                                   # (B, L, 3D)
    qkv = qkv.reshape(B, L, num_heads, 3 * hd).transpose(0, 2, 1, 3)
    q, k, v = qkv[..., :hd], qkv[..., hd:2 * hd], qkv[..., 2 * hd:]
    s = jnp.einsum('bhqd,bhkd->bhqk', q, k) / sqrt(D)
    p = jax.nn.softmax(s, axis=-1)
    heads = jnp.einsum('bhqk,bhkd->bhqd', p, v)
    heads = heads.transpose(0, 2, 1, 3).reshape(B, L, D)
    msa = heads @ wo + bo
    x1 = msa + x
    h1 = ln(x1, ln2_w, ln2_b) @ w1 + b1
    h1 = jax.nn.gelu(h1, approximate=False)
    return h1 @ w2 + b2 + x1


# ------------------------- parameter init -------------------------
def init_params(key, d_model):
    D = d_model

    def linear(key, fan_in, fan_out):
        kw, kb = jax.random.split(key)
        bound = 1.0 / sqrt(fan_in)
        w = jax.random.uniform(kw, (fan_in, fan_out), jnp.float32, -bound, bound)
        b = jax.random.uniform(kb, (1, fan_out), jnp.float32, -bound, bound)
        return w, b

    k1, k2, k3, k4 = jax.random.split(key, 4)
    ln1_w = jnp.ones((1, D), jnp.float32)
    ln1_b = jnp.zeros((1, D), jnp.float32)
    ln2_w = jnp.ones((1, D), jnp.float32)
    ln2_b = jnp.zeros((1, D), jnp.float32)
    wqkv, bqkv = linear(k1, D, 3 * D)
    wo, bo = linear(k2, D, D)
    w1, b1 = linear(k3, D, 2 * D)
    w2, b2 = linear(k4, 2 * D, D)
    return (ln1_w, ln1_b, wqkv, bqkv, wo, bo,
            ln2_w, ln2_b, w1, b1, w2, b2)


if __name__ == "__main__":
    B, L, D, H = 2, 8, 32, 4   # batch, max_len, d_model, num_heads

    key = jax.random.PRNGKey(0)
    kx, kp = jax.random.split(key)
    x = jax.random.normal(kx, (B, L, D), jnp.float32)
    params = init_params(kp, D)

    ref = transformer_enc_ref(x, params, H)

    # Default path: bf16 MXU operands, f32 accumulation.
    prep_bf16 = prepare_params(params, H)                       # one-time prep
    out = jax.block_until_ready(transformer_enc(x, prep_bf16, H))
    assert out.shape == (B, L, D)
    assert jnp.allclose(out, ref, atol=2.5e-2, rtol=2.5e-2), (
        float(jnp.max(jnp.abs(out - ref))))

    # f32-operand path: must match the pure-f32 reference tightly.
    prep_f32 = prepare_params(params, H, use_bf16_matmul=False)
    out_f32 = jax.block_until_ready(transformer_enc(x, prep_f32, H))
    assert jnp.allclose(out_f32, ref, atol=1e-3, rtol=1e-3), (
        float(jnp.max(jnp.abs(out_f32 - ref))))

    print("KERNEL_OK")
</pallas_src>

<mosaic_0001>
module attributes {stable_mosaic.version = 11 : i64} {
  func.func @transformer_enc_kernel(%arg0: i32, %arg1: i32, %arg2: memref<1x8x32xf32, #tpu.memory_space<vmem>>, %arg3: memref<1x8x32xf32, #tpu.memory_space<vmem>>, %arg4: memref<1x32xf32, #tpu.memory_space<vmem>>, %arg5: memref<1x32xf32, #tpu.memory_space<vmem>>, %arg6: memref<32x32xbf16, #tpu.memory_space<vmem>>, %arg7: memref<1x32xf32, #tpu.memory_space<vmem>>, %arg8: memref<32x64xbf16, #tpu.memory_space<vmem>>, %arg9: memref<1x64xf32, #tpu.memory_space<vmem>>, %arg10: memref<32x32xbf16, #tpu.memory_space<vmem>>, %arg11: memref<1x32xf32, #tpu.memory_space<vmem>>, %arg12: memref<1x32xf32, #tpu.memory_space<vmem>>, %arg13: memref<1x32xf32, #tpu.memory_space<vmem>>, %arg14: memref<32x64xbf16, #tpu.memory_space<vmem>>, %arg15: memref<1x64xf32, #tpu.memory_space<vmem>>, %arg16: memref<64x32xbf16, #tpu.memory_space<vmem>>, %arg17: memref<1x32xf32, #tpu.memory_space<vmem>>, %arg18: memref<1x8x32xf32, #tpu.memory_space<vmem>>, %arg19: memref<8x32xf32, #tpu.memory_space<vmem>>) attributes {dimension_semantics = [#tpu.dimension_semantics<parallel>, #tpu.dimension_semantics<parallel>], iteration_bounds = array<i64: 2, 1>, scalar_prefetch = 0 : i64, scratch_operands = 1 : i64, tpu.core_type = #tpu.core_type<tc>, window_params = [{transform_indices = @transform_0, window_bounds = array<i64: 1, 8, 32>}, {transform_indices = @transform_1, window_bounds = array<i64: 1, 8, 32>}, {pipeline_mode = #tpu.pipeline_mode<synchronous>, transform_indices = @transform_2, window_bounds = array<i64: 1, 32>}, {pipeline_mode = #tpu.pipeline_mode<synchronous>, transform_indices = @transform_3, window_bounds = array<i64: 1, 32>}, {pipeline_mode = #tpu.pipeline_mode<synchronous>, transform_indices = @transform_4, window_bounds = array<i64: 32, 32>}, {pipeline_mode = #tpu.pipeline_mode<synchronous>, transform_indices = @transform_5, window_bounds = array<i64: 1, 32>}, {pipeline_mode = #tpu.pipeline_mode<synchronous>, transform_indices = @transform_6, window_bounds = array<i64: 32, 64>}, {pipeline_mode = #tpu.pipeline_mode<synchronous>, transform_indices = @transform_7, window_bounds = array<i64: 1, 64>}, {pipeline_mode = #tpu.pipeline_mode<synchronous>, transform_indices = @transform_8, window_bounds = array<i64: 32, 32>}, {pipeline_mode = #tpu.pipeline_mode<synchronous>, transform_indices = @transform_9, window_bounds = array<i64: 1, 32>}, {pipeline_mode = #tpu.pipeline_mode<synchronous>, transform_indices = @transform_10, window_bounds = array<i64: 1, 32>}, {pipeline_mode = #tpu.pipeline_mode<synchronous>, transform_indices = @transform_11, window_bounds = array<i64: 1, 32>}, {pipeline_mode = #tpu.pipeline_mode<synchronous>, transform_indices = @transform_12, window_bounds = array<i64: 32, 64>}, {pipeline_mode = #tpu.pipeline_mode<synchronous>, transform_indices = @transform_13, window_bounds = array<i64: 1, 64>}, {pipeline_mode = #tpu.pipeline_mode<synchronous>, transform_indices = @transform_14, window_bounds = array<i64: 64, 32>}, {pipeline_mode = #tpu.pipeline_mode<synchronous>, transform_indices = @transform_15, window_bounds = array<i64: 1, 32>}, {transform_indices = @transform_16, window_bounds = array<i64: 1, 8, 32>}]} {
    %c0 = arith.constant 0 : index
    %c0_0 = arith.constant 0 : index
    %c0_1 = arith.constant 0 : index
    %0 = vector.load %arg2[%c0, %c0_0, %c0_1] : memref<1x8x32xf32, #tpu.memory_space<vmem>>, vector<1x8x32xf32>
    %1 = vector.shape_cast %0 : vector<1x8x32xf32> to vector<8x32xf32>
    %c0_2 = arith.constant 0 : index
    %c0_3 = arith.constant 0 : index
    %c0_4 = arith.constant 0 : index
    %2 = vector.load %arg3[%c0_2, %c0_3, %c0_4] : memref<1x8x32xf32, #tpu.memory_space<vmem>>, vector<1x8x32xf32>
    %3 = vector.shape_cast %2 : vector<1x8x32xf32> to vector<8x32xf32>
    %c0_5 = arith.constant 0 : index
    %c0_6 = arith.constant 0 : index
    %4 = vector.load %arg4[%c0_5, %c0_6] : memref<1x32xf32, #tpu.memory_space<vmem>>, vector<1x32xf32>
    %c0_7 = arith.constant 0 : index
    %c0_8 = arith.constant 0 : index
    %5 = vector.load %arg5[%c0_7, %c0_8] : memref<1x32xf32, #tpu.memory_space<vmem>>, vector<1x32xf32>
    %cst = arith.constant dense<0.000000e+00> : vector<8xf32>
    %6 = vector.multi_reduction <add>, %1, %cst [1] : vector<8x32xf32> to vector<8xf32>
    %7 = vector.shape_cast %6 : vector<8xf32> to vector<8x1xf32>
    %cst_9 = arith.constant 3.200000e+01 : f32
    %8 = vector.broadcast %cst_9 : f32 to vector<8x1xf32>
    %9 = arith.divf %7, %8 : vector<8x1xf32>
    %10 = vector.broadcast %9 : vector<8x1xf32> to vector<8x32xf32>
    %11 = arith.subf %1, %10 : vector<8x32xf32>
    %12 = arith.mulf %11, %11 : vector<8x32xf32>
    %cst_10 = arith.constant dense<0.000000e+00> : vector<8xf32>
    %13 = vector.multi_reduction <add>, %12, %cst_10 [1] : vector<8x32xf32> to vector<8xf32>
    %14 = vector.shape_cast %13 : vector<8xf32> to vector<8x1xf32>
    %cst_11 = arith.constant 3.200000e+01 : f32
    %15 = vector.broadcast %cst_11 : f32 to vector<8x1xf32>
    %16 = arith.divf %14, %15 : vector<8x1xf32>
    %17 = vector.broadcast %9 : vector<8x1xf32> to vector<8x32xf32>
    %18 = arith.subf %1, %17 : vector<8x32xf32>
    %cst_12 = arith.constant 9.99999974E-6 : f32
    %19 = vector.broadcast %cst_12 : f32 to vector<8x1xf32>
    %20 = arith.addf %16, %19 : vector<8x1xf32>
    %21 = math.rsqrt %20 : vector<8x1xf32>
    %22 = vector.broadcast %21 : vector<8x1xf32> to vector<8x32xf32>
    %23 = arith.mulf %18, %22 : vector<8x32xf32>
    %24 = vector.broadcast %4 : vector<1x32xf32> to vector<8x32xf32>
    %25 = arith.mulf %23, %24 : vector<8x32xf32>
    %26 = vector.broadcast %5 : vector<1x32xf32> to vector<8x32xf32>
    %27 = arith.addf %25, %26 : vector<8x32xf32>
    %cst_13 = arith.constant dense<0.000000e+00> : vector<8xf32>
    %28 = vector.multi_reduction <add>, %3, %cst_13 [1] : vector<8x32xf32> to vector<8xf32>
    %29 = vector.shape_cast %28 : vector<8xf32> to vector<8x1xf32>
    %cst_14 = arith.constant 3.200000e+01 : f32
    %30 = vector.broadcast %cst_14 : f32 to vector<8x1xf32>
    %31 = arith.divf %29, %30 : vector<8x1xf32>
    %32 = vector.broadcast %31 : vector<8x1xf32> to vector<8x32xf32>
    %33 = arith.subf %3, %32 : vector<8x32xf32>
    %34 = arith.mulf %33, %33 : vector<8x32xf32>
    %cst_15 = arith.constant dense<0.000000e+00> : vector<8xf32>
    %35 = vector.multi_reduction <add>, %34, %cst_15 [1] : vector<8x32xf32> to vector<8xf32>
    %36 = vector.shape_cast %35 : vector<8xf32> to vector<8x1xf32>
    %cst_16 = arith.constant 3.200000e+01 : f32
    %37 = vector.broadcast %cst_16 : f32 to vector<8x1xf32>
    %38 = arith.divf %36, %37 : vector<8x1xf32>
    %39 = vector.broadcast %31 : vector<8x1xf32> to vector<8x32xf32>
    %40 = arith.subf %3, %39 : vector<8x32xf32>
    %cst_17 = arith.constant 9.99999974E-6 : f32
    %41 = vector.broadcast %cst_17 : f32 to vector<8x1xf32>
    %42 = arith.addf %38, %41 : vector<8x1xf32>
    %43 = math.rsqrt %42 : vector<8x1xf32>
    %44 = vector.broadcast %43 : vector<8x1xf32> to vector<8x32xf32>
    %45 = arith.mulf %40, %44 : vector<8x32xf32>
    %46 = vector.broadcast %4 : vector<1x32xf32> to vector<8x32xf32>
    %47 = arith.mulf %45, %46 : vector<8x32xf32>
    %48 = vector.broadcast %5 : vector<1x32xf32> to vector<8x32xf32>
    %49 = arith.addf %47, %48 : vector<8x32xf32>
    %c0_18 = arith.constant 0 : index
    %c0_19 = arith.constant 0 : index
    %50 = vector.load %arg6[%c0_18, %c0_19] : memref<32x32xbf16, #tpu.memory_space<vmem>>, vector<32x32xbf16>
    %51 = arith.truncf %27 : vector<8x32xf32> to vector<8x32xbf16>
    %cst_20 = arith.constant dense<0.000000e+00> : vector<8x32xf32>
    %52 = tpu.matmul %51, %50, %cst_20 {dimension_numbers = #tpu.dot_dimension_numbers<[1], [0], [0], [1], [0, 0, 1, 1], [], []>} : vector<8x32xbf16>, vector<32x32xbf16>, vector<8x32xf32> -> vector<8x32xf32>
    %c0_21 = arith.constant 0 : index
    %c0_22 = arith.constant 0 : index
    %53 = vector.load %arg7[%c0_21, %c0_22] : memref<1x32xf32, #tpu.memory_space<vmem>>, vector<1x32xf32>
    %54 = vector.broadcast %53 : vector<1x32xf32> to vector<8x32xf32>
    %55 = arith.addf %52, %54 : vector<8x32xf32>
    %c0_23 = arith.constant 0 : index
    %c0_24 = arith.constant 0 : index
    %56 = vector.load %arg8[%c0_23, %c0_24] : memref<32x64xbf16, #tpu.memory_space<vmem>>, vector<32x64xbf16>
    %57 = arith.truncf %49 : vector<8x32xf32> to vector<8x32xbf16>
    %cst_25 = arith.constant dense<0.000000e+00> : vector<8x64xf32>
    %58 = tpu.matmul %57, %56, %cst_25 {dimension_numbers = #tpu.dot_dimension_numbers<[1], [0], [0], [1], [0, 0, 1, 1], [], []>} : vector<8x32xbf16>, vector<32x64xbf16>, vector<8x64xf32> -> vector<8x64xf32>
    %c0_26 = arith.constant 0 : index
    %c0_27 = arith.constant 0 : index
    %59 = vector.load %arg9[%c0_26, %c0_27] : memref<1x64xf32, #tpu.memory_space<vmem>>, vector<1x64xf32>
    %60 = vector.broadcast %59 : vector<1x64xf32> to vector<8x64xf32>
    %61 = arith.addf %58, %60 : vector<8x64xf32>
    %62 = vector.extract_strided_slice %55 {offsets = [0, 0], sizes = [8, 8], strides = [1, 1]} : vector<8x32xf32> to vector<8x8xf32>
    %63 = vector.extract_strided_slice %61 {offsets = [0, 0], sizes = [8, 8], strides = [1, 1]} : vector<8x64xf32> to vector<8x8xf32>
    %64 = vector.extract_strided_slice %61 {offsets = [0, 32], sizes = [8, 8], strides = [1, 1]} : vector<8x64xf32> to vector<8x8xf32>
    %65 = arith.truncf %62 : vector<8x8xf32> to vector<8x8xbf16>
    %66 = arith.truncf %63 : vector<8x8xf32> to vector<8x8xbf16>
    %cst_28 = arith.constant dense<0.000000e+00> : vector<8x8xf32>
    %67 = tpu.matmul %65, %66, %cst_28 {dimension_numbers = #tpu.dot_dimension_numbers<[1], [1], [0], [0], [0, 0, 1, 0], [], []>} : vector<8x8xbf16>, vector<8x8xbf16>, vector<8x8xf32> -> vector<8x8xf32>
    %cst_29 = arith.constant dense<0xFF800000> : vector<8xf32>
    %68 = vector.multi_reduction <maximumf>, %67, %cst_29 [1] : vector<8x8xf32> to vector<8xf32>
    %69 = vector.shape_cast %68 : vector<8xf32> to vector<8x1xf32>
    %70 = vector.broadcast %69 : vector<8x1xf32> to vector<8x8xf32>
    %71 = arith.subf %67, %70 : vector<8x8xf32>
    %72 = math.exp %71 : vector<8x8xf32>
    %cst_30 = arith.constant dense<0.000000e+00> : vector<8xf32>
    %73 = vector.multi_reduction <add>, %72, %cst_30 [1] : vector<8x8xf32> to vector<8xf32>
    %74 = vector.shape_cast %73 : vector<8xf32> to vector<8x1xf32>
    %75 = tpu.reciprocal %74 {approx = true} : vector<8x1xf32> -> vector<8x1xf32>
    %76 = vector.broadcast %75 : vector<8x1xf32> to vector<8x8xf32>
    %77 = arith.mulf %72, %76 : vector<8x8xf32>
    %78 = arith.truncf %77 : vector<8x8xf32> to vector<8x8xbf16>
    %79 = arith.truncf %64 : vector<8x8xf32> to vector<8x8xbf16>
    %cst_31 = arith.constant dense<0.000000e+00> : vector<8x8xf32>
    %80 = tpu.matmul %78, %79, %cst_31 {dimension_numbers = #tpu.dot_dimension_numbers<[1], [0], [0], [1], [0, 0, 1, 1], [], []>} : vector<8x8xbf16>, vector<8x8xbf16>, vector<8x8xf32> -> vector<8x8xf32>
    %c0_32 = arith.constant 0 : index
    %c0_33 = arith.constant 0 : index
    %81 = vector.load %arg19[%c0_32, %c0_33] : memref<8x32xf32, #tpu.memory_space<vmem>>, vector<8x8xf32>
    tpu.vector_store %arg19[%c0_32, %c0_33], %80 {strides = array<i32>} : memref<8x32xf32, #tpu.memory_space<vmem>>, vector<8x8xf32>,
    %82 = vector.extract_strided_slice %55 {offsets = [0, 8], sizes = [8, 8], strides = [1, 1]} : vector<8x32xf32> to vector<8x8xf32>
    %83 = vector.extract_strided_slice %61 {offsets = [0, 8], sizes = [8, 8], strides = [1, 1]} : vector<8x64xf32> to vector<8x8xf32>
    %84 = vector.extract_strided_slice %61 {offsets = [0, 40], sizes = [8, 8], strides = [1, 1]} : vector<8x64xf32> to vector<8x8xf32>
    %85 = arith.truncf %82 : vector<8x8xf32> to vector<8x8xbf16>
    %86 = arith.truncf %83 : vector<8x8xf32> to vector<8x8xbf16>
    %cst_34 = arith.constant dense<0.000000e+00> : vector<8x8xf32>
    %87 = tpu.matmul %85, %86, %cst_34 {dimension_numbers = #tpu.dot_dimension_numbers<[1], [1], [0], [0], [0, 0, 1, 0], [], []>} : vector<8x8xbf16>, vector<8x8xbf16>, vector<8x8xf32> -> vector<8x8xf32>
    %cst_35 = arith.constant dense<0xFF800000> : vector<8xf32>
    %88 = vector.multi_reduction <maximumf>, %87, %cst_35 [1] : vector<8x8xf32> to vector<8xf32>
    %89 = vector.shape_cast %88 : vector<8xf32> to vector<8x1xf32>
    %90 = vector.broadcast %89 : vector<8x1xf32> to vector<8x8xf32>
    %91 = arith.subf %87, %90 : vector<8x8xf32>
    %92 = math.exp %91 : vector<8x8xf32>
    %cst_36 = arith.constant dense<0.000000e+00> : vector<8xf32>
    %93 = vector.multi_reduction <add>, %92, %cst_36 [1] : vector<8x8xf32> to vector<8xf32>
    %94 = vector.shape_cast %93 : vector<8xf32> to vector<8x1xf32>
    %95 = tpu.reciprocal %94 {approx = true} : vector<8x1xf32> -> vector<8x1xf32>
    %96 = vector.broadcast %95 : vector<8x1xf32> to vector<8x8xf32>
    %97 = arith.mulf %92, %96 : vector<8x8xf32>
    %98 = arith.truncf %97 : vector<8x8xf32> to vector<8x8xbf16>
    %99 = arith.truncf %84 : vector<8x8xf32> to vector<8x8xbf16>
    %cst_37 = arith.constant dense<0.000000e+00> : vector<8x8xf32>
    %100 = tpu.matmul %98, %99, %cst_37 {dimension_numbers = #tpu.dot_dimension_numbers<[1], [0], [0], [1], [0, 0, 1, 1], [], []>} : vector<8x8xbf16>, vector<8x8xbf16>, vector<8x8xf32> -> vector<8x8xf32>
    %c0_38 = arith.constant 0 : index
    %c8 = arith.constant 8 : index
    %101 = vector.load %arg19[%c0_38, %c8] : memref<8x32xf32, #tpu.memory_space<vmem>>, vector<8x8xf32>
    tpu.vector_store %arg19[%c0_38, %c8], %100 {strides = array<i32>} : memref<8x32xf32, #tpu.memory_space<vmem>>, vector<8x8xf32>,
    %102 = vector.extract_strided_slice %55 {offsets = [0, 16], sizes = [8, 8], strides = [1, 1]} : vector<8x32xf32> to vector<8x8xf32>
    %103 = vector.extract_strided_slice %61 {offsets = [0, 16], sizes = [8, 8], strides = [1, 1]} : vector<8x64xf32> to vector<8x8xf32>
    %104 = vector.extract_strided_slice %61 {offsets = [0, 48], sizes = [8, 8], strides = [1, 1]} : vector<8x64xf32> to vector<8x8xf32>
    %105 = arith.truncf %102 : vector<8x8xf32> to vector<8x8xbf16>
    %106 = arith.truncf %103 : vector<8x8xf32> to vector<8x8xbf16>
    %cst_39 = arith.constant dense<0.000000e+00> : vector<8x8xf32>
    %107 = tpu.matmul %105, %106, %cst_39 {dimension_numbers = #tpu.dot_dimension_numbers<[1], [1], [0], [0], [0, 0, 1, 0], [], []>} : vector<8x8xbf16>, vector<8x8xbf16>, vector<8x8xf32> -> vector<8x8xf32>
    %cst_40 = arith.constant dense<0xFF800000> : vector<8xf32>
    %108 = vector.multi_reduction <maximumf>, %107, %cst_40 [1] : vector<8x8xf32> to vector<8xf32>
    %109 = vector.shape_cast %108 : vector<8xf32> to vector<8x1xf32>
    %110 = vector.broadcast %109 : vector<8x1xf32> to vector<8x8xf32>
    %111 = arith.subf %107, %110 : vector<8x8xf32>
    %112 = math.exp %111 : vector<8x8xf32>
    %cst_41 = arith.constant dense<0.000000e+00> : vector<8xf32>
    %113 = vector.multi_reduction <add>, %112, %cst_41 [1] : vector<8x8xf32> to vector<8xf32>
    %114 = vector.shape_cast %113 : vector<8xf32> to vector<8x1xf32>
    %115 = tpu.reciprocal %114 {approx = true} : vector<8x1xf32> -> vector<8x1xf32>
    %116 = vector.broadcast %115 : vector<8x1xf32> to vector<8x8xf32>
    %117 = arith.mulf %112, %116 : vector<8x8xf32>
    %118 = arith.truncf %117 : vector<8x8xf32> to vector<8x8xbf16>
    %119 = arith.truncf %104 : vector<8x8xf32> to vector<8x8xbf16>
    %cst_42 = arith.constant dense<0.000000e+00> : vector<8x8xf32>
    %120 = tpu.matmul %118, %119, %cst_42 {dimension_numbers = #tpu.dot_dimension_numbers<[1], [0], [0], [1], [0, 0, 1, 1], [], []>} : vector<8x8xbf16>, vector<8x8xbf16>, vector<8x8xf32> -> vector<8x8xf32>
    %c0_43 = arith.constant 0 : index
    %c16 = arith.constant 16 : index
    %121 = vector.load %arg19[%c0_43, %c16] : memref<8x32xf32, #tpu.memory_space<vmem>>, vector<8x8xf32>
    tpu.vector_store %arg19[%c0_43, %c16], %120 {strides = array<i32>} : memref<8x32xf32, #tpu.memory_space<vmem>>, vector<8x8xf32>,
    %122 = vector.extract_strided_slice %55 {offsets = [0, 24], sizes = [8, 8], strides = [1, 1]} : vector<8x32xf32> to vector<8x8xf32>
    %123 = vector.extract_strided_slice %61 {offsets = [0, 24], sizes = [8, 8], strides = [1, 1]} : vector<8x64xf32> to vector<8x8xf32>
    %124 = vector.extract_strided_slice %61 {offsets = [0, 56], sizes = [8, 8], strides = [1, 1]} : vector<8x64xf32> to vector<8x8xf32>
    %125 = arith.truncf %122 : vector<8x8xf32> to vector<8x8xbf16>
    %126 = arith.truncf %123 : vector<8x8xf32> to vector<8x8xbf16>
    %cst_44 = arith.constant dense<0.000000e+00> : vector<8x8xf32>
    %127 = tpu.matmul %125, %126, %cst_44 {dimension_numbers = #tpu.dot_dimension_numbers<[1], [1], [0], [0], [0, 0, 1, 0], [], []>} : vector<8x8xbf16>, vector<8x8xbf16>, vector<8x8xf32> -> vector<8x8xf32>
    %cst_45 = arith.constant dense<0xFF800000> : vector<8xf32>
    %128 = vector.multi_reduction <maximumf>, %127, %cst_45 [1] : vector<8x8xf32> to vector<8xf32>
    %129 = vector.shape_cast %128 : vector<8xf32> to vector<8x1xf32>
    %130 = vector.broadcast %129 : vector<8x1xf32> to vector<8x8xf32>
    %131 = arith.subf %127, %130 : vector<8x8xf32>
    %132 = math.exp %131 : vector<8x8xf32>
    %cst_46 = arith.constant dense<0.000000e+00> : vector<8xf32>
    %133 = vector.multi_reduction <add>, %132, %cst_46 [1] : vector<8x8xf32> to vector<8xf32>
    %134 = vector.shape_cast %133 : vector<8xf32> to vector<8x1xf32>
    %135 = tpu.reciprocal %134 {approx = true} : vector<8x1xf32> -> vector<8x1xf32>
    %136 = vector.broadcast %135 : vector<8x1xf32> to vector<8x8xf32>
    %137 = arith.mulf %132, %136 : vector<8x8xf32>
    %138 = arith.truncf %137 : vector<8x8xf32> to vector<8x8xbf16>
    %139 = arith.truncf %124 : vector<8x8xf32> to vector<8x8xbf16>
    %cst_47 = arith.constant dense<0.000000e+00> : vector<8x8xf32>
    %140 = tpu.matmul %138, %139, %cst_47 {dimension_numbers = #tpu.dot_dimension_numbers<[1], [0], [0], [1], [0, 0, 1, 1], [], []>} : vector<8x8xbf16>, vector<8x8xbf16>, vector<8x8xf32> -> vector<8x8xf32>
    %c0_48 = arith.constant 0 : index
    %c24 = arith.constant 24 : index
    %141 = vector.load %arg19[%c0_48, %c24] : memref<8x32xf32, #tpu.memory_space<vmem>>, vector<8x8xf32>
    tpu.vector_store %arg19[%c0_48, %c24], %140 {strides = array<i32>} : memref<8x32xf32, #tpu.memory_space<vmem>>, vector<8x8xf32>,
    %c0_49 = arith.constant 0 : index
    %c0_50 = arith.constant 0 : index
    %142 = vector.load %arg19[%c0_49, %c0_50] : memref<8x32xf32, #tpu.memory_space<vmem>>, vector<8x32xf32>
    %c0_51 = arith.constant 0 : index
    %c0_52 = arith.constant 0 : index
    %143 = vector.load %arg10[%c0_51, %c0_52] : memref<32x32xbf16, #tpu.memory_space<vmem>>, vector<32x32xbf16>
    %144 = arith.truncf %142 : vector<8x32xf32> to vector<8x32xbf16>
    %cst_53 = arith.constant dense<0.000000e+00> : vector<8x32xf32>
    %145 = tpu.matmul %144, %143, %cst_53 {dimension_numbers = #tpu.dot_dimension_numbers<[1], [0], [0], [1], [0, 0, 1, 1], [], []>} : vector<8x32xbf16>, vector<32x32xbf16>, vector<8x32xf32> -> vector<8x32xf32>
    %c0_54 = arith.constant 0 : index
    %c0_55 = arith.constant 0 : index
    %146 = vector.load %arg11[%c0_54, %c0_55] : memref<1x32xf32, #tpu.memory_space<vmem>>, vector<1x32xf32>
    %147 = vector.broadcast %146 : vector<1x32xf32> to vector<8x32xf32>
    %148 = arith.addf %145, %147 : vector<8x32xf32>
    %149 = arith.addf %148, %1 : vector<8x32xf32>
    %c0_56 = arith.constant 0 : index
    %c0_57 = arith.constant 0 : index
    %150 = vector.load %arg12[%c0_56, %c0_57] : memref<1x32xf32, #tpu.memory_space<vmem>>, vector<1x32xf32>
    %c0_58 = arith.constant 0 : index
    %c0_59 = arith.constant 0 : index
    %151 = vector.load %arg13[%c0_58, %c0_59] : memref<1x32xf32, #tpu.memory_space<vmem>>, vector<1x32xf32>
    %cst_60 = arith.constant dense<0.000000e+00> : vector<8xf32>
    %152 = vector.multi_reduction <add>, %149, %cst_60 [1] : vector<8x32xf32> to vector<8xf32>
    %153 = vector.shape_cast %152 : vector<8xf32> to vector<8x1xf32>
    %cst_61 = arith.constant 3.200000e+01 : f32
    %154 = vector.broadcast %cst_61 : f32 to vector<8x1xf32>
    %155 = arith.divf %153, %154 : vector<8x1xf32>
    %156 = vector.broadcast %155 : vector<8x1xf32> to vector<8x32xf32>
    %157 = arith.subf %149, %156 : vector<8x32xf32>
    %158 = arith.mulf %157, %157 : vector<8x32xf32>
    %cst_62 = arith.constant dense<0.000000e+00> : vector<8xf32>
    %159 = vector.multi_reduction <add>, %158, %cst_62 [1] : vector<8x32xf32> to vector<8xf32>
    %160 = vector.shape_cast %159 : vector<8xf32> to vector<8x1xf32>
    %cst_63 = arith.constant 3.200000e+01 : f32
    %161 = vector.broadcast %cst_63 : f32 to vector<8x1xf32>
    %162 = arith.divf %160, %161 : vector<8x1xf32>
    %163 = vector.broadcast %155 : vector<8x1xf32> to vector<8x32xf32>
    %164 = arith.subf %149, %163 : vector<8x32xf32>
    %cst_64 = arith.constant 9.99999974E-6 : f32
    %165 = vector.broadcast %cst_64 : f32 to vector<8x1xf32>
    %166 = arith.addf %162, %165 : vector<8x1xf32>
    %167 = math.rsqrt %166 : vector<8x1xf32>
    %168 = vector.broadcast %167 : vector<8x1xf32> to vector<8x32xf32>
    %169 = arith.mulf %164, %168 : vector<8x32xf32>
    %170 = vector.broadcast %150 : vector<1x32xf32> to vector<8x32xf32>
    %171 = arith.mulf %169, %170 : vector<8x32xf32>
    %172 = vector.broadcast %151 : vector<1x32xf32> to vector<8x32xf32>
    %173 = arith.addf %171, %172 : vector<8x32xf32>
    %c0_65 = arith.constant 0 : index
    %c0_66 = arith.constant 0 : index
    %174 = vector.load %arg14[%c0_65, %c0_66] : memref<32x64xbf16, #tpu.memory_space<vmem>>, vector<32x64xbf16>
    %175 = arith.truncf %173 : vector<8x32xf32> to vector<8x32xbf16>
    %cst_67 = arith.constant dense<0.000000e+00> : vector<8x64xf32>
    %176 = tpu.matmul %175, %174, %cst_67 {dimension_numbers = #tpu.dot_dimension_numbers<[1], [0], [0], [1], [0, 0, 1, 1], [], []>} : vector<8x32xbf16>, vector<32x64xbf16>, vector<8x64xf32> -> vector<8x64xf32>
    %c0_68 = arith.constant 0 : index
    %c0_69 = arith.constant 0 : index
    %177 = vector.load %arg15[%c0_68, %c0_69] : memref<1x64xf32, #tpu.memory_space<vmem>>, vector<1x64xf32>
    %178 = vector.broadcast %177 : vector<1x64xf32> to vector<8x64xf32>
    %179 = arith.addf %176, %178 : vector<8x64xf32>
    %cst_70 = arith.constant 5.000000e-01 : f32
    %180 = vector.broadcast %cst_70 : f32 to vector<8x64xf32>
    %181 = arith.mulf %180, %179 : vector<8x64xf32>
    %cst_71 = arith.constant 0.707106769 : f32
    %182 = vector.broadcast %cst_71 : f32 to vector<8x64xf32>
    %183 = arith.mulf %179, %182 : vector<8x64xf32>
    %184 = math.erf %183 : vector<8x64xf32>
    %cst_72 = arith.constant 1.000000e+00 : f32
    %185 = vector.broadcast %cst_72 : f32 to vector<8x64xf32>
    %186 = arith.addf %185, %184 : vector<8x64xf32>
    %187 = arith.mulf %181, %186 : vector<8x64xf32>
    %c0_73 = arith.constant 0 : index
    %c0_74 = arith.constant 0 : index
    %188 = vector.load %arg16[%c0_73, %c0_74] : memref<64x32xbf16, #tpu.memory_space<vmem>>, vector<64x32xbf16>
    %189 = arith.truncf %187 : vector<8x64xf32> to vector<8x64xbf16>
    %cst_75 = arith.constant dense<0.000000e+00> : vector<8x32xf32>
    %190 = tpu.matmul %189, %188, %cst_75 {dimension_numbers = #tpu.dot_dimension_numbers<[1], [0], [0], [1], [0, 0, 1, 1], [], []>} : vector<8x64xbf16>, vector<64x32xbf16>, vector<8x32xf32> -> vector<8x32xf32>
    %c0_76 = arith.constant 0 : index
    %c0_77 = arith.constant 0 : index
    %191 = vector.load %arg17[%c0_76, %c0_77] : memref<1x32xf32, #tpu.memory_space<vmem>>, vector<1x32xf32>
    %192 = vector.broadcast %191 : vector<1x32xf32> to vector<8x32xf32>
    %193 = arith.addf %190, %192 : vector<8x32xf32>
    %194 = arith.addf %193, %149 : vector<8x32xf32>
    %195 = vector.shape_cast %194 : vector<8x32xf32> to vector<1x8x32xf32>
    %c0_78 = arith.constant 0 : index
    %c0_79 = arith.constant 0 : index
    %c0_80 = arith.constant 0 : index
    %196 = vector.load %arg18[%c0_78, %c0_79, %c0_80] : memref<1x8x32xf32, #tpu.memory_space<vmem>>, vector<1x8x32xf32>
    tpu.vector_store %arg18[%c0_78, %c0_79, %c0_80], %195 {strides = array<i32>} : memref<1x8x32xf32, #tpu.memory_space<vmem>>, vector<1x8x32xf32>,
    return
  }
  func.func @transform_0(%arg0: i32, %arg1: i32) -> (i32, i32, i32) {
    %c0_i32 = arith.constant 0 : i32
    %c0_i32_0 = arith.constant 0 : i32
    return %arg0, %arg1, %c0_i32 : i32, i32, i32
  }
  func.func @transform_1(%arg0: i32, %arg1: i32) -> (i32, i32, i32) {
    %c0_i32 = arith.constant 0 : i32
    %c0_i32_0 = arith.constant 0 : i32
    %c0_i32_1 = arith.constant 0 : i32
    return %arg0, %c0_i32, %c0_i32_0 : i32, i32, i32
  }
  func.func @transform_2(%arg0: i32, %arg1: i32) -> (i32, i32) {
    %c0_i32 = arith.constant 0 : i32
    %c0_i32_0 = arith.constant 0 : i32
    %c0_i32_1 = arith.constant 0 : i32
    return %c0_i32, %c0_i32_0 : i32, i32
  }
  func.func @transform_3(%arg0: i32, %arg1: i32) -> (i32, i32) {
    %c0_i32 = arith.constant 0 : i32
    %c0_i32_0 = arith.constant 0 : i32
    %c0_i32_1 = arith.constant 0 : i32
    return %c0_i32, %c0_i32_0 : i32, i32
  }
  func.func @transform_4(%arg0: i32, %arg1: i32) -> (i32, i32) {
    %c0_i32 = arith.constant 0 : i32
    %c0_i32_0 = arith.constant 0 : i32
    %c0_i32_1 = arith.constant 0 : i32
    return %c0_i32, %c0_i32_0 : i32, i32
  }
  func.func @transform_5(%arg0: i32, %arg1: i32) -> (i32, i32) {
    %c0_i32 = arith.constant 0 : i32
    %c0_i32_0 = arith.constant 0 : i32
    %c0_i32_1 = arith.constant 0 : i32
    return %c0_i32, %c0_i32_0 : i32, i32
  }
  func.func @transform_6(%arg0: i32, %arg1: i32) -> (i32, i32) {
    %c0_i32 = arith.constant 0 : i32
    %c0_i32_0 = arith.constant 0 : i32
    %c0_i32_1 = arith.constant 0 : i32
    return %c0_i32, %c0_i32_0 : i32, i32
  }
  func.func @transform_7(%arg0: i32, %arg1: i32) -> (i32, i32) {
    %c0_i32 = arith.constant 0 : i32
    %c0_i32_0 = arith.constant 0 : i32
    %c0_i32_1 = arith.constant 0 : i32
    return %c0_i32, %c0_i32_0 : i32, i32
  }
  func.func @transform_8(%arg0: i32, %arg1: i32) -> (i32, i32) {
    %c0_i32 = arith.constant 0 : i32
    %c0_i32_0 = arith.constant 0 : i32
    %c0_i32_1 = arith.constant 0 : i32
    return %c0_i32, %c0_i32_0 : i32, i32
  }
  func.func @transform_9(%arg0: i32, %arg1: i32) -> (i32, i32) {
    %c0_i32 = arith.constant 0 : i32
    %c0_i32_0 = arith.constant 0 : i32
    %c0_i32_1 = arith.constant 0 : i32
    return %c0_i32, %c0_i32_0 : i32, i32
  }
  func.func @transform_10(%arg0: i32, %arg1: i32) -> (i32, i32) {
    %c0_i32 = arith.constant 0 : i32
    %c0_i32_0 = arith.constant 0 : i32
    %c0_i32_1 = arith.constant 0 : i32
    return %c0_i32, %c0_i32_0 : i32, i32
  }
  func.func @transform_11(%arg0: i32, %arg1: i32) -> (i32, i32) {
    %c0_i32 = arith.constant 0 : i32
    %c0_i32_0 = arith.constant 0 : i32
    %c0_i32_1 = arith.constant 0 : i32
    return %c0_i32, %c0_i32_0 : i32, i32
  }
  func.func @transform_12(%arg0: i32, %arg1: i32) -> (i32, i32) {
    %c0_i32 = arith.constant 0 : i32
    %c0_i32_0 = arith.constant 0 : i32
    %c0_i32_1 = arith.constant 0 : i32
    return %c0_i32, %c0_i32_0 : i32, i32
  }
  func.func @transform_13(%arg0: i32, %arg1: i32) -> (i32, i32) {
    %c0_i32 = arith.constant 0 : i32
    %c0_i32_0 = arith.constant 0 : i32
    %c0_i32_1 = arith.constant 0 : i32
    return %c0_i32, %c0_i32_0 : i32, i32
  }
  func.func @transform_14(%arg0: i32, %arg1: i32) -> (i32, i32) {
    %c0_i32 = arith.constant 0 : i32
    %c0_i32_0 = arith.constant 0 : i32
    %c0_i32_1 = arith.constant 0 : i32
    return %c0_i32, %c0_i32_0 : i32, i32
  }
  func.func @transform_15(%arg0: i32, %arg1: i32) -> (i32, i32) {
    %c0_i32 = arith.constant 0 : i32
    %c0_i32_0 = arith.constant 0 : i32
    %c0_i32_1 = arith.constant 0 : i32
    return %c0_i32, %c0_i32_0 : i32, i32
  }
  func.func @transform_16(%arg0: i32, %arg1: i32) -> (i32, i32, i32) {
    %c0_i32 = arith.constant 0 : i32
    %c0_i32_0 = arith.constant 0 : i32
    return %arg0, %arg1, %c0_i32 : i32, i32, i32
  }
}

</mosaic_0001>

<bundles_post_ra>
// kernel: tpu_custom_call.1
= control target key start
LH: loop header
LB: loop body
LE: loop exit
PB: predicated region body
PF: predicated region fallthrough
CT: control target
= control target key end

     0   :  { %s2740_s0 = inlined_call_operand.vmem [shape: f32[2,8,32], index: 0, kind: input, shape index: {}]   ;;  %s2741_s1 = inlined_call_operand.vmem [shape: f32[2,8,32], index: 1, kind: input, shape index: {}]   ;;  %s2742_s2 = inlined_call_operand.vmem [shape: f32[1,32], index: 2, kind: input, shape index: {}]   ;;  %s2743_s3 = inlined_call_operand.vmem [shape: f32[1,32], index: 3, kind: input, shape index: {}]   ;;  %s2744_s4 = inlined_call_operand.vmem [shape: bf16[32,32], index: 4, kind: input, shape index: {}]   ;;  %s2745_s5 = inlined_call_operand.hbm [shape: f32[1,32], index: 5, kind: input, shape index: {}]   ;;  %s2746_s6 = inlined_call_operand.hbm [shape: bf16[32,64], index: 6, kind: input, shape index: {}]   ;;  %s2747_s7 = inlined_call_operand.hbm [shape: f32[1,64], index: 7, kind: input, shape index: {}]   ;;  %s2748_s8 = inlined_call_operand.hbm [shape: bf16[32,32], index: 8, kind: input, shape index: {}]   ;;  %s2749_s9 = inlined_call_operand.hbm [shape: f32[1,32], index: 9, kind: input, shape index: {}]   ;;  %s2750_s10 = inlined_call_operand.vmem [shape: f32[1,32], index: 10, kind: input, shape index: {}]   ;;  %s2751_s11 = inlined_call_operand.vmem [shape: f32[1,32], index: 11, kind: input, shape index: {}]   ;;  %s2752_s12 = inlined_call_operand.vmem [shape: bf16[32,64], index: 12, kind: input, shape index: {}]   ;;  %s2753_s13 = inlined_call_operand.vmem [shape: f32[1,64], index: 13, kind: input, shape index: {}]   ;;  %s2754_s14 = inlined_call_operand.vmem [shape: bf16[64,32], index: 14, kind: input, shape index: {}]   ;;  %s2755_s15 = inlined_call_operand.vmem [shape: f32[1,32], index: 15, kind: input, shape index: {}]   ;;  %s2756_s16 = inlined_call_operand.hbm [shape: f32[2,8,32], index: 16, kind: output, shape index: {}]  }
   0x1   :  { %2773 = sst [smem:[#allocation26_spill]] %s2740_s0 }
   0x2   :  { %2774 = sst [smem:[#allocation27_spill]] %s2746_s6 }
   0x3   :  { %2775 = sst [smem:[#allocation28_spill]] %s2753_s13 }
   0x4   :  { %2776 = sst [smem:[#allocation29_spill]] %s2754_s14 }
   0x5   :  { %2777 = sst [smem:[#allocation30_spill]] %s2755_s15 }
   0x6   :  { %2778 = sst [smem:[#allocation31_spill]] %s2756_s16 }
   0x7   :  { %21 = vsyncpa [#allocation4], 0 }
   0x8   :  { %22 = vsyncpa [#allocation7], 0 }
   0x9   :  { %23 = vsyncpa [#allocation10], 0 }
   0xa   :  { %24 = vsyncpa [#allocation5], 0 }
   0xb   :  { %26 = vsyncpa [#allocation5 + $0x1], 0  ;;  %s2348_s21 = smov 0   ;;  %s2350_s22 = smov 0  }
   0xc   :  { %s2352_s23 = smov 0   ;;  %s2354_s24 = smov 0  }
   0xd   :  { %s2356_s25 = smov 0   ;;  %s2358_s26 = smov 0  }
   0xe LB: > { %2779 = sst [smem:[#allocation17_spill]] %s2221_s21  ;;  %s1674_s27 = sadd.s32 4294967295, %s2241_s26   ;;  %s2241_s26 = sphi %s2358_s26, %s32_s26   ;;  %s2237_s25 = sphi %s2356_s25, %s2813_s25   ;;  %s2233_s24 = sphi %s2354_s24, %s2812_s24   ;;  %s2229_s23 = sphi %s2352_s23, %s2811_s23   ;;  %s2225_s22 = sphi %s2350_s22, %s2810_s22   ;;  %s2221_s21 = sphi %s2348_s21, %s2809_s21  }
   0xf   : > { %2780 = sst [smem:[#allocation18_spill]] %s2225_s22  ;;  %s1675_s28 = sadd.s32 4294967294, %s2241_s26  }
  0x10   : > { %2781 = sst [smem:[#allocation19_spill]] %s2229_s23  ;;  %s44_s29 = sadd.s32 1, %s2237_s25 }
  0x11   : > { %2782 = sst [smem:[#allocation20_spill]] %s2237_s25  ;;  %s401_s30 = sadd.s32 1, %s2229_s23 }
  0x12   : > { %2783 = sst [smem:[#allocation21_spill]] %s2241_s26  ;;  %p46_p0 = scmp.ge.s32.totalorder %s44_s29, 2 }
  0x13   : > { %p411_p1 = scmp.ne.s32.totalorder %s2229_s23, %s2225_s22  ;;  %p412_p2 = scmp.eq.s32.totalorder %s1674_s27, 1 }
  0x14   : > { %p417_p3 = scmp.ne.s32.totalorder %s2225_s22, %s2221_s21  ;;  %s2815_s29 = smov (%p46_p0, %s44_s29), 0 }
  0x15   : > { %2784 = sst [smem:[#allocation22_spill]] %s2815_s29  ;;  %p2388_p4 = por %p412_p2, %p411_p1 }
  0x16   : > { %p418_p5 = scmp.eq.s32.totalorder %s1675_s28, 1  ;;  %s396_s17 = ssub.s32 %s2237_s25, %s2815_s29 }
  0x17   : > { %s2785_s0 = scalar_select %p2388_p4, 1, 0 }
  0x18   : > { %p1676_p6 = scmp.ge.s32.totalorder %s2241_s26, 1  ;;  %p399_p7 = scmp.eq.s32.totalorder %s396_s17, 0 }
  0x19   : > { %2786 = sst [smem:[#allocation23_spill]] %s2785_s0  ;;  %p2395_p8 = por %p418_p5, %p417_p3 }
  0x1a   : > { %p425_p9 = scmp.lt.s32.totalorder %s2241_s26, 3  ;;  %p2407_p11 = scmp.eq.s32.totalorder %s1674_s27, 0 }
  0x1b   : > { %s2787_s18 = scalar_select %p2395_p8, 1, 0 }
  0x1c   : > { %s2401_s19 = scalar_select %p399_p7, %s2229_s23, %s401_s30  }
  0x1d   : > { %2788 = sst [smem:[#allocation24_spill]] %s2787_s18  ;;  %p2403_p10 = pnand %p1676_p6, %p425_p9 }
  0x1e   : > { %2789 = sst [smem:[#allocation25_spill]] %s2401_s19  ;;  %s2243_s28 = smov [#allocation6]  }
  0x1f   : > { %s2790_s20 = scalar_select %p2403_p10, 1, 0 }
  0x20   : > { %s2791_s21 = scalar_select %p2407_p11, 1, 0 }
  0x21   : > { %p1877_p12 = pneg %p2403_p10  ;;  %s457_s17 = sshll.u32 %s2243_s28, 4  ;;  %s458_s17 = int_to_ptr.vmem [resolvable:$true] %s457_s17 }
  0x22   : > { %s2244_s30 = smov [#allocation9]   ;;  %s2793_s6 = sld [smem:[#allocation27_spill]] }
  0x23   : > { %p2415_p13 = pnand %p2407_p11, %p1877_p12  ;;  %s481_s25 = sshll.u32 %s2244_s30, 4  ;;  %s2419_s25 = int_to_ptr.vmem [resolvable:$true] %s481_s25 }
  0x25   : > { %p2429_p1 = pneg %p2415_p13 }
  0x28   : > { %s2011_s23 = scalar_lea.hbm %s2793_s6, 256 }
  0x29   : > { %p2012_p0 = scmp.ne.s32.totalorder %s2793_s6, %s2011_s23  ;;  %p2018_p5 = scmp.lt.u32.totalorder %s2011_s23, %s2793_s6 }
  0x2b   : > { %p2014_p2 = pnand %p2429_p1, %p2012_p0 }
  0x2d   : > { %p2015_p3 = pneg %p2014_p2 }
  0x2f   : > { %p2020_p6 = pnand %p2018_p5, %p2015_p3 }
  0x31   : > { %2023 = shalt.err (!%p2020_p6)
}
  0x32   : > { %s2024_s19 = scalar_lea.vmem %s458_s17, 256  ;;  %p2032_p8 = scmp.lt.s32.totalorder %s458_s17, %s458_s17 }
  0x33   : > { %p2025_p7 = scmp.ne.s32.totalorder %s458_s17, %s2024_s19  ;;  %p2033_p4 = scmp.lt.s32.totalorder %s2024_s19, %s2024_s19 }
  0x35   : > { %p2027_p9 = pnand %p2025_p7, %p2429_p1  ;;  %p2034_p11 = por %p2033_p4, %p2032_p8 }
  0x37   : > { %p2028_p12 = pneg %p2027_p9 }
  0x39   : > { %p2035_p10 = pnand %p2034_p11, %p2028_p12 }
  0x3b   : > { %2038 = shalt.err (!%p2035_p10)
}
  0x3c   : > { %s2245_s26 = smov 64   ;;  %s2246_s18 = smov 4  }
  0x3d   : > { %1883 = dma.hbm_to_vmem [thread:$0]  (!%p2415_p13), %s2793_s6, 256, %s458_s17, [#allocation7], %s2245_s26, %s2245_s26, %s2246_s18  }
  0x3e   : > { %s2039_s0 = scalar_lea.hbm %s2748_s8, 256 }
  0x3f   : > { %p2040_p0 = scmp.ne.s32.totalorder %s2748_s8, %s2039_s0  ;;  %p2046_p10 = scmp.lt.u32.totalorder %s2039_s0, %s2748_s8 }
  0x41   : > { %p2042_p4 = pnand %p2040_p0, %p2429_p1 }
  0x43   : > { %p2043_p8 = pneg %p2042_p4 }
  0x45   : > { %p2048_p11 = pnand %p2046_p10, %p2043_p8 }
  0x47   : > { %2051 = shalt.err (!%p2048_p11)
}
  0x48   : > { %s2052_s17 = scalar_lea.vmem %s2419_s25, 256  ;;  %p2060_p6 = scmp.lt.s32.totalorder %s2419_s25, %s2419_s25 }
  0x49   : > { %p2053_p2 = scmp.ne.s32.totalorder %s2419_s25, %s2052_s17  ;;  %p2061_p7 = scmp.lt.s32.totalorder %s2052_s17, %s2052_s17 }
  0x4b   : > { %p2055_p3 = pnand %p2053_p2, %p2429_p1  ;;  %p2062_p9 = por %p2061_p7, %p2060_p6 }
  0x4d   : > { %p2056_p5 = pneg %p2055_p3 }
  0x4f   : > { %p2063_p12 = pnand %p2062_p9, %p2056_p5 }
  0x51   : > { %2066 = shalt.err (!%p2063_p12)
}
  0x52   : > { %1889 = dma.hbm_to_vmem [thread:$0]  (!%p2415_p13), %s2748_s8, 256, %s2419_s25, [#allocation10], %s2245_s26, %s2245_s26, %s2246_s18  }
  0x53   : > { %s2247_s22 = smov [#allocation3]   ;;  %s2248_s16 = smov [#allocation8]  }
  0x54   : > { %s447_s0 = sshll.u32 %s2247_s22, 4  ;;  %s471_s23 = sshll.u32 %s2248_s16, 4  ;;  %s448_s0 = int_to_ptr.vmem [resolvable:$true] %s447_s0  ;;  %s472_s23 = int_to_ptr.vmem [resolvable:$true] %s471_s23 }
  0x55   : > { %s2067_s19 = scalar_lea.hbm %s2745_s5, 16 }
  0x56   : > { %p2068_p0 = scmp.ne.s32.totalorder %s2745_s5, %s2067_s19  ;;  %p2074_p10 = scmp.lt.u32.totalorder %s2067_s19, %s2745_s5 }
  0x58   : > { %p2070_p4 = pnand %p2068_p0, %p2429_p1 }
  0x5a   : > { %p2071_p8 = pneg %p2070_p4 }
  0x5c   : > { %p2076_p11 = pnand %p2074_p10, %p2071_p8 }
  0x5e   : > { %2079 = shalt.err (!%p2076_p11)
}
  0x5f   : > { %s2080_s25 = scalar_lea.vmem %s448_s0, 16  ;;  %s2087_s26 = scalar_lea.vmem %s448_s0, 32 }
  0x60   : > { %p2081_p2 = scmp.ne.s32.totalorder %s448_s0, %s2080_s25  ;;  %p2088_p6 = scmp.lt.s32.totalorder %s448_s0, %s448_s0 }
  0x61   : > { %p2089_p7 = scmp.lt.s32.totalorder %s2087_s26, %s2080_s25 }
  0x62   : > { %p2083_p3 = pnand %p2081_p2, %p2429_p1 }
  0x63   : > { %p2090_p9 = por %p2089_p7, %p2088_p6 }
  0x64   : > { %p2084_p5 = pneg %p2083_p3 }
  0x66   : > { %p2091_p12 = pnand %p2090_p9, %p2084_p5 }
  0x68   : > { %2094 = shalt.err (!%p2091_p12)
}
  0x69   : > { %1880 = dma.hbm_to_vmem [thread:$0]  (!%p2415_p13), %s2745_s5, 16, %s448_s0, [#allocation4]  }
  0x6a   : > { %s2095_s22 = scalar_lea.hbm %s2747_s7, 16 }
  0x6b   : > { %p2096_p0 = scmp.ne.s32.totalorder %s2747_s7, %s2095_s22  ;;  %p2102_p10 = scmp.lt.u32.totalorder %s2095_s22, %s2747_s7 }
  0x6d   : > { %p2098_p4 = pnand %p2096_p0, %p2429_p1 }
  0x6f   : > { %p2099_p8 = pneg %p2098_p4 }
  0x71   : > { %p2104_p11 = pnand %p2102_p10, %p2099_p8 }
  0x73   : > { %2107 = shalt.err (!%p2104_p11)
}
  0x74   : > { %s2108_s17 = scalar_lea.vmem %s472_s23, 16  ;;  %s2115_s0 = scalar_lea.vmem %s472_s23, 32 }
  0x75   : > { %p2109_p2 = scmp.ne.s32.totalorder %s472_s23, %s2108_s17  ;;  %p2116_p6 = scmp.lt.s32.totalorder %s472_s23, %s472_s23 }
  0x76   : > { %p2117_p7 = scmp.lt.s32.totalorder %s2115_s0, %s2108_s17 }
  0x77   : > { %p2111_p3 = pnand %p2109_p2, %p2429_p1 }
  0x78   : > { %p2118_p9 = por %p2117_p7, %p2116_p6 }
  0x79   : > { %p2112_p5 = pneg %p2111_p3 }
  0x7b   : > { %p2119_p12 = pnand %p2118_p9, %p2112_p5 }
  0x7d   : > { %2122 = shalt.err (!%p2119_p12)
}
  0x7e   : > { %1886 = dma.hbm_to_vmem [thread:$0]  (!%p2415_p13), %s2747_s7, 16, %s472_s23, [#allocation7]  }
  0x7f   : > { %s2249_s26 = smov [#allocation11]   ;;  %s2123_s15 = scalar_lea.hbm %s2749_s9, 16 }
  0x80   : > { %s495_s6 = sshll.u32 %s2249_s26, 4  ;;  %p2124_p0 = scmp.ne.s32.totalorder %s2749_s9, %s2123_s15  ;;  %s496_s6 = int_to_ptr.vmem [resolvable:$true] %s495_s6 }
  0x81   : > { %p2130_p10 = scmp.lt.u32.totalorder %s2123_s15, %s2749_s9 }
  0x82   : > { %p2126_p4 = pnand %p2124_p0, %p2429_p1 }
  0x84   : > { %p2127_p8 = pneg %p2126_p4 }
  0x86   : > { %p2132_p11 = pnand %p2130_p10, %p2127_p8 }
  0x88   : > { %2135 = shalt.err (!%p2132_p11)
}
  0x89   : > { %s2136_s23 = scalar_lea.vmem %s496_s6, 16  ;;  %s2143_s19 = scalar_lea.vmem %s496_s6, 32 }
  0x8a   : > { %p2137_p2 = scmp.ne.s32.totalorder %s496_s6, %s2136_s23  ;;  %p2144_p6 = scmp.lt.s32.totalorder %s496_s6, %s496_s6 }
  0x8b   : > { %p2145_p7 = scmp.lt.s32.totalorder %s2143_s19, %s2136_s23 }
  0x8c   : > { %p2139_p3 = pnand %p2137_p2, %p2429_p1 }
  0x8d   : > { %p2146_p9 = por %p2145_p7, %p2144_p6 }
  0x8e   : > { %p2140_p5 = pneg %p2139_p3 }
  0x90   : > { %p2147_p12 = pnand %p2146_p9, %p2140_p5 }
  0x92   : > { %2150 = shalt.err (!%p2147_p12)
}
  0x93   : > { %1892 = dma.hbm_to_vmem [thread:$0]  (!%p2415_p13), %s2749_s9, 16, %s496_s6, [#allocation10]  }
  0x94   : > { %p2795_p0 = scmp.ne.s32.totalorder %s2790_s20, 0 }
  0x95   : > { %p2796_p4 = scmp.ne.s32.totalorder (!%p2795_p0), %s2791_s21, 0 }
  0x96   : > { %543 = sbr.rel (%p2795_p0) target bundleno = 2748 (0xabc), region = 84 }
  0x9d   : > { %2204 = dma.done.wait (%p2796_p4), [#allocation4], 16  }
  0x9e   : > { %2206 = vsyncadd (%p2796_p4), [#allocation4], 4294967280 }
  0x9f   : > { %2208 = dma.done.wait (%p2796_p4), [#allocation7], 272  }
  0xa0   : > { %2210 = vsyncadd (%p2796_p4), [#allocation7], 4294967024 }
  0xa1   : > { %2212 = dma.done.wait (%p2796_p4), [#allocation10], 272  }
  0xa2   : > { %2214 = vsyncadd (%p2796_p4), [#allocation10], 4294967024  ;;  %p615_p13 = scmp.lt.s32.totalorder %s2233_s24, 1  ;;  %s2797_s25 = sld [smem:[#allocation26_spill]]  ;;  %vm631_vm0 = vcmask 261120   ;;  %v1975_v14 = vld [vmem:[%s2744_s4] sm:$0xff]  }
  0xa3   : > { %v2250_v15 = vmov 0.0   ;;  %v1976_v16 = vld [vmem:[%s2744_s4 + $0x8] sm:$0xff]   ;;  %vm2251_vm1 = vmmov 0   ;;  %v1692_v24 = vld [vmem:[%s2742_s2] ss:$0 sm:$0xff]  ;;  %v1978_v34 = vld [vmem:[#allocation6 + $0x8] sm:$0xff]  }
  0xa4   : > { %s616_s29 = scalar_select %p615_p13, %s2233_s24, 1  ;;  %1763 = vmatprep.subr.bf16.mxu1 %v2250_v15  ;;  %1779 = vmatprep.subr.bf16.mxu0 %v2250_v15  ;;  %v1693_v26 = vld [vmem:[%s2743_s3] ss:$0 sm:$0xff]  ;;  %v1977_v31 = vld [vmem:[#allocation6] sm:$0xff]   ;;  %v1694_v37 = vld [vmem:[#allocation3] ss:$0 sm:$0xff] }
  0xa5   : > { %1764 = vmatpush3.bf16.msra.mxu1 %v1975_v14  ;;  %1767 = vmatprep.mubr.msk.bf16.mxu1 %vm2251_vm1, %v2250_v15  ;;  %s2252_s17 = smov 120   ;;  %v1698_v44 = vld [vmem:[#allocation8] ss:$0 sm:$0xff]  ;;  %vm811_vm2 = vcmask 64512   ;;  %s2253_s0 = smov 112   ;;  %vm876_vm3 = vcmask 1043456  }
  0xa6   : > { %s1690_s20 = sshll.u32 %s616_s29, 3  ;;  %1765 = vmatprep.subr.bf16.mxu1 %v2250_v15  ;;  %1781 = vmatprep.mubr.msk.bf16.mxu0 %vm2251_vm1, %v2250_v15  ;;  %s2254_s29 = smov 104   ;;  %vm1036_vm4 = vcmask 130112   ;;  %vm1152_vm5 = vcmask 195712   ;;  %vm1268_vm6 = vcmask 261312   ;;  %vm1480_vm7 = vcmask 523264  }
  0xa7   : > { %s625_s14 = scalar_lea.vmem %s2741_s1, %s1690_s20  ;;  %s2256_s28 = smov 80  }
  0xa8   : > { %s621_s26 = scalar_lea.vmem %s2797_s25, %s1690_s20  ;;  %v628_v1 = vld [vmem:[%s625_s14] sm:$0xff]  ;;  %s2255_s20 = smov 88  }
  0xa9   : > { %v2544_v0 = vld [vmem:[%s621_s26] sm:$0xff]  ;;  %v660_v3 = vsel %vm631_vm0, %v628_v1, 0.0  ;;  %1766 = vmatpush3.bf16.msra.mxu1 %v1976_v16  ;;  %s2257_s13 = smov 96   ;;  %s2258_s25 = smov 72  }
  0xaa   : > { %v632_v2 = vsel %vm631_vm0, %v2544_v0, 0.0  ;;  %1771 = vmatprep.subr.bf16.mxu1 %v2250_v15  ;;  %s2259_s26 = smov 8   ;;  %s2260_s6 = smov 16  }
  0xab   : > { %633 = vadd.xlane.f32.xlu0 %v632_v2  ;;  %s2261_s18 = smov 24   ;;  %s2799_s14 = sld [smem:[#allocation28_spill]] }
  0xac   : > { %s2800_s21 = sld [smem:[#allocation18_spill]]  ;;  %s2801_s30 = sld [smem:[#allocation30_spill]] }
  0xad   : > { %s2802_s23 = sld [smem:[#allocation23_spill]]  ;;  %s1727_s19 = sshll.u32 %s2233_s24, 7 }
  0xaf   : > { %661 = vadd.xlane.f32.xlu0 %v660_v3 }
  0xb2   : > { %s612_s15 = sand.u32 1, %s2800_s21  }
  0xb3   : > { %s1689_s22 = sshll.u32 %s612_s15, 3  ;;  %s1527_s24 = scalar_lea.sflag [#allocation5], %s612_s15 }
  0xb4   : > { %p2804_p8 = scmp.ne.s32.totalorder %s2802_s23, 0 }
 0x138   : > { %v634_v4 = vpop.xlane.xlu0 %633 }
 0x139   : > { %v636_v5 = vmul.f32 0.03125, %v634_v4 }
 0x13b   : > { %v637_v6 = vsub.f32 %v2544_v0, %v636_v5 }
 0x13c   : > { %v662_v7 = vpop.xlane.xlu0 %661 }
 0x13d   : > { %v663_v8 = vmul.f32 0.03125, %v662_v7  ;;  %v638_v9 = vmul.f32 %v637_v6, %v637_v6 }
 0x13f   : > { %v664_v10 = vsub.f32 %v628_v1, %v663_v8  ;;  %v639_v11 = vsel %vm631_vm0, %v638_v9, 0.0 }
 0x140   : > { %640 = vadd.xlane.f32.xlu1 %v639_v11 }
 0x141   : > { %v665_v12 = vmul.f32 %v664_v10, %v664_v10 }
 0x143   : > { %v666_v13 = vsel %vm631_vm0, %v665_v12, 0.0 }
 0x144   : > { %667 = vadd.xlane.f32.xlu1 %v666_v13 }
 0x1cd   : > { %v641_v17 = vpop.xlane.xlu1 %640 }
 0x1ce   : > { %v642_v18 = vmul.f32 0.03125, %v641_v17 }
 0x1d0   : > { %v643_v19 = vadd.f32 1e-05, %v642_v18 }
 0x1d1   : > { %v668_v20 = vpop.xlane.xlu1 %667 }
 0x1d2   : > { %1987 = vrsqrt.f32 %v643_v19  ;;  %v669_v21 = vmul.f32 0.03125, %v668_v20 }
 0x1d4   : > { %v670_v22 = vadd.f32 1e-05, %v669_v21 }
 0x1d6   : > { %1989 = vrsqrt.f32 %v670_v22 }
 0x1dc   : > { %v1988_v23 = vpop.eup %1987 }
 0x1dd   : > { %v645_v25 = vmul.f32 %v1988_v23, %v637_v6 }
 0x1df   : > { %v652_v27 = vmul.f32 %v1692_v24, %v645_v25 }
 0x1e0   : > { %v1990_v28 = vpop.eup %1989 }
 0x1e1   : > { %v672_v29 = vmul.f32 %v1990_v28, %v664_v10  ;;  %v659_v30 = vadd.f32 %v1693_v26, %v652_v27 }
 0x1e3   : > { %v673_v32 = vmul.f32 %v1692_v24, %v672_v29  ;;  %v679_v33 = vpack.c.bf16 %v659_v30, %v659_v30 }
 0x1e5   : > { %1768 = vmatmul.mubr.msk.bf16.vlgmr.msra.gmra.mrb[0].mxu1 %vm631_vm0, %v679_v33  ;;  %v674_v35 = vadd.f32 %v1693_v26, %v673_v32 }
 0x1e6   : > { %1772 = vmatpush3.bf16.msra.mxu1 %v1977_v31  ;;  %1775 = vmatprep.mubr.msk.bf16.mxu1 %vm2251_vm1, %v2250_v15 }
 0x1e7   : > { %1773 = vmatprep.subr.bf16.mxu1 %v2250_v15  ;;  %v746_v36 = vpack.c.bf16 %v674_v35, %v674_v35 }
 0x1ea   : > { %1774 = vmatpush3.bf16.msra.mxu1 %v1978_v34 }
 0x1eb   : > { %1785 = vmatprep.subr.bf16.mxu1 %v2250_v15 }
 0x1ed   : > { %1776 = vmatmul.mubr.msk.bf16.vlgmr.msra.gmra.mrb[4].mxu1 %vm631_vm0, %v746_v36 }
 0x1ee   : > { %1787 = vmatprep.mubr.msk.bf16.mxu1 %vm2251_vm1, %v2250_v15 }
 0x2b8   : > { %v736_v38 = vpop.f32.mrb[0].mxu1 }
 0x2b9   : > { %v737_v39 = vadd.f32 %v1694_v37, %v736_v38  ;;  %v1769_v40 = vpop.f32.mrb[1].mxu1 }
 0x2ba   : > { %v739_v41 = vpop.f32.mrb[2].mxu1 }
 0x2bb   : > { %v809_v42 = vpack.c.bf16 %v737_v39, %v737_v39  ;;  %v1770_v43 = vpop.f32.mrb[3].mxu1 }
 0x2bd   : > { %922 = vrot.lane.b32.xlu1 %v809_v42, %s2252_s17 }
 0x2c0   : > { %v803_v45 = vpop.f32.mrb[4].mxu1 }
 0x2c1   : > { %v804_v46 = vadd.f32 %v1698_v44, %v803_v45  ;;  %v1777_v47 = vpop.f32.mrb[5].mxu1 }
 0x2c2   : > { %v806_v48 = vpop.f32.mrb[6].mxu1 }
 0x2c3   : > { %v2580_v49 = vpack.c.bf16 %v804_v46, %v804_v46  ;;  %v1778_v50 = vpop.f32.mrb[7].mxu1 }
 0x2c5   : > { %1040 = vrot.lane.b32.xlu1 %v2580_v49, %s2253_s0  ;;  %924 = vrot.lane.b32.xlu0 %v2580_v49, %s2252_s17  ;;  %v816_v51 = vsel %vm811_vm2, %v2580_v49, 0  ;;  %s614_s17 = scalar_lea.vmem [#allocation12], %s1689_s22 }
 0x2c6   : > { %1780 = vmatpush3.bf16.xpose.msra.mxu0 %v816_v51 }
 0x2c7   : > { %1791 = vmatprep.subr.bf16.mxu0 %v2250_v15 }
 0x2c9   : > { %1038 = vrot.lane.b32.xlu1 %v809_v42, %s2253_s0  ;;  %1156 = vrot.lane.b32.xlu0 %v2580_v49, %s2254_s29  ;;  %s2798_s0 = sld [smem:[#allocation29_spill]] }
 0x2cd   : > { %1154 = vrot.lane.b32.xlu1 %v809_v42, %s2254_s29  ;;  %1782 = vmatmul.mubr.msk.bf16.vlgmr.msra.gmra.mrb[0].mxu0 %vm811_vm2, %v809_v42  ;;  %s1541_s29 = sshll.u32 %s614_s17, 4  ;;  %s2694_s29 = int_to_ptr.vmem [resolvable:$true] %s1541_s29 }
 0x2ce   : > { %1793 = vmatprep.mubr.msk.bf16.mxu0 %vm2251_vm1, %v2250_v15 }
 0x32f   : > { %v923_v54 = vpop.permute.xlu1 %922 }
 0x337   : > { %v925_v52 = vpop.permute.xlu0 %924  ;;  %v1041_v55 = vpop.permute.xlu1 %1040 }
 0x338   : > { %v930_v53 = vsel %vm811_vm2, %v925_v52, 0  ;;  %v1046_v56 = vsel %vm811_vm2, %v1041_v55, 0 }
 0x339   : > { %1792 = vmatpush3.bf16.xpose.msra.mxu0 %v930_v53 }
 0x33a   : > { %1803 = vmatprep.subr.bf16.mxu0 %v2250_v15 }
 0x33b   : > { %v1157_v57 = vpop.permute.xlu0 %1156  ;;  %v1039_v58 = vpop.permute.xlu1 %1038 }
 0x33c   : > { %v1162_v59 = vsel %vm811_vm2, %v1157_v57, 0 }
 0x33f   : > { %v1155_v60 = vpop.permute.xlu1 %1154 }
 0x340   : > { %1794 = vmatmul.mubr.msk.bf16.vlgmr.msra.gmra.mrb[4].mxu0 %vm811_vm2, %v923_v54 }
 0x341   : > { %1804 = vmatpush3.bf16.xpose.msra.mxu0 %v1046_v56  ;;  %1805 = vmatprep.mubr.msk.bf16.mxu0 %vm2251_vm1, %v2250_v15 }
 0x342   : > { %1815 = vmatprep.subr.bf16.mxu0 %v2250_v15 }
 0x348   : > { %1806 = vmatmul.mubr.msk.bf16.vlgmr.msra.gmra.mrb[8].mxu0 %vm811_vm2, %v1039_v58 }
 0x349   : > { %1816 = vmatpush3.bf16.xpose.msra.mxu0 %v1162_v59  ;;  %1817 = vmatprep.mubr.msk.bf16.mxu0 %vm2251_vm1, %v2250_v15 }
 0x34a   : > { %1827 = vmatprep.subr.bf16.mxu0 %v2250_v15 }
 0x350   : > { %1818 = vmatmul.mubr.msk.bf16.vlgmr.msra.gmra.mrb[12].mxu0 %vm811_vm2, %v1155_v60 }
 0x351   : > { %1831 = vmatprep.mubr.msk.bf16.mxu0 %vm2251_vm1, %v2250_v15 }
 0x3a0   : > { %v852_v61 = vpop.f32.mrb[0].mxu0 }
 0x3a1   : > { %v1783_v62 = vpop.f32.mrb[1].mxu0  ;;  %v858_v63 = vsel %vm811_vm2, %v852_v61, -inf }
 0x3a2   : > { %859 = vmax.xlane.f32.xlu0 %v858_v63  ;;  %v855_v1 = vpop.f32.mrb[2].mxu0 }
 0x3a3   : > { %v1784_v2 = vpop.f32.mrb[3].mxu0 }
 0x413   : > { %v966_v3 = vpop.f32.mrb[4].mxu0 }
 0x414   : > { %v1795_v4 = vpop.f32.mrb[5].mxu0  ;;  %v972_v5 = vsel %vm811_vm2, %v966_v3, -inf }
 0x415   : > { %973 = vmax.xlane.f32.xlu1 %v972_v5  ;;  %v969_v6 = vpop.f32.mrb[6].mxu0 }
 0x416   : > { %v1796_v7 = vpop.f32.mrb[7].mxu0 }
 0x41b   : > { %v1082_v8 = vpop.f32.mrb[8].mxu0 }
 0x41c   : > { %v1807_v9 = vpop.f32.mrb[9].mxu0  ;;  %v1088_v10 = vsel %vm811_vm2, %v1082_v8, -inf }
 0x41d   : > { %1089 = vmax.xlane.f32.xlu0 %v1088_v10  ;;  %v1085_v11 = vpop.f32.mrb[10].mxu0 }
 0x41e   : > { %v1808_v12 = vpop.f32.mrb[11].mxu0 }
 0x41f   : > { %v1979_v12 = vld [vmem:[#allocation9] sm:$0xff]  }
 0x420   : > { %1828 = vmatpush3.bf16.msra.mxu0 %v1979_v12 }
 0x421   : > { %1829 = vmatprep.subr.bf16.mxu0 %v2250_v15 }
 0x423   : > { %v1198_v13 = vpop.f32.mrb[12].mxu0 }
 0x424   : > { %v1819_v14 = vpop.f32.mrb[13].mxu0  ;;  %v1204_v16 = vsel %vm811_vm2, %v1198_v13, -inf }
 0x425   : > { %1205 = vmax.xlane.f32.xlu0 %v1204_v16  ;;  %v1201_v17 = vpop.f32.mrb[14].mxu0 }
 0x426   : > { %v1820_v18 = vpop.f32.mrb[15].mxu0 }
 0x42f   : > { %v860_v19 = vpop.xlane.xlu0 %859 }
 0x430   : > { %v861_v20 = vsub.f32 %v852_v61, %v860_v19 }
 0x432   : > { %v862_v21 = vmul.f32 1.442695, %v861_v20 }
 0x434   : > { %1991 = vpow2.f32 %v862_v21 }
 0x43e   : > { %v1992_v22 = vpop.eup %1991 }
 0x43f   : > { %v864_v23 = vsel %vm811_vm2, %v1992_v22, 0.0 }
 0x440   : > { %865 = vadd.xlane.f32.xlu0 %v864_v23 }
 0x4a2   : > { %v974_v24 = vpop.xlane.xlu1 %973 }
 0x4a3   : > { %v975_v25 = vsub.f32 %v966_v3, %v974_v24  ;;  %v1710_v24 = vld [vmem:[#allocation11] ss:$0 sm:$0xff] }
 0x4a5   : > { %v976_v26 = vmul.f32 1.442695, %v975_v25 }
 0x4a7   : > { %1993 = vpow2.f32 %v976_v26 }
 0x4aa   : > { %v1090_v27 = vpop.xlane.xlu0 %1089 }
 0x4ab   : > { %v1091_v28 = vsub.f32 %v1082_v8, %v1090_v27 }
 0x4ad   : > { %v1092_v29 = vmul.f32 1.442695, %v1091_v28 }
 0x4af   : > { %1995 = vpow2.f32 %v1092_v29 }
 0x4b1   : > { %v1994_v30 = vpop.eup %1993 }
 0x4b2   : > { %v978_v31 = vsel %vm811_vm2, %v1994_v30, 0.0  ;;  %v1206_v34 = vpop.xlane.xlu0 %1205 }
 0x4b3   : > { %979 = vadd.xlane.f32.xlu1 %v978_v31  ;;  %v1207_v35 = vsub.f32 %v1198_v13, %v1206_v34  ;;  %v1980_v13 = vld [vmem:[#allocation9 + $0x8] sm:$0xff]  }
 0x4b4   : > { %1830 = vmatpush3.bf16.msra.mxu0 %v1980_v13 }
 0x4b5   : > { %v1208_v36 = vmul.f32 1.442695, %v1207_v35  ;;  %1843 = vmatprep.subr.bf16.mxu0 %v2250_v15 }
 0x4b7   : > { %1997 = vpow2.f32 %v1208_v36 }
 0x4b9   : > { %v1996_v32 = vpop.eup %1995 }
 0x4ba   : > { %v1094_v33 = vsel %vm811_vm2, %v1996_v32, 0.0 }
 0x4bb   : > { %1095 = vadd.xlane.f32.xlu0 %v1094_v33 }
 0x4c1   : > { %v1998_v37 = vpop.eup %1997 }
 0x4c2   : > { %v1210_v38 = vsel %vm811_vm2, %v1998_v37, 0.0 }
 0x4c4   : > { %984 = vrot.lane.b32.xlu1 %v2580_v49, %s2255_s20 }
 0x4c8   : > { %1100 = vrot.lane.b32.xlu1 %v2580_v49, %s2256_s28 }
 0x4cd   : > { %v866_v39 = vpop.xlane.xlu0 %865 }
 0x4ce   : > { %1999 = vrcp.f32 %v866_v39 }
 0x4d1   : > { %871 = vrot.lane.b32.xlu0 %v2580_v49, %s2257_s13  ;;  %s2803_s13 = sld [smem:[#allocation31_spill]] }
 0x4d8   : > { %v2000_v41 = vpop.eup %1999 }
 0x4d9   : > { %v868_v43 = vmul.f32 %v2000_v41, %v1992_v22 }
 0x4db   : > { %v869_v47 = vpack.c.bf16 %v868_v43, %v868_v43 }
 0x4ec   : > { %1211 = vadd.xlane.f32.xlu1 %v1210_v38 }
 0x4fd   : > { %1216 = vrot.lane.b32.xlu1 %v2580_v49, %s2258_s25  ;;  %s2692_s25 = scalar_lea.hbm %s2803_s13, %s1727_s19 }
 0x540   : > { %v980_v40 = vpop.xlane.xlu1 %979 }
 0x541   : > { %2001 = vrcp.f32 %v980_v40 }
 0x544   : > { %v985_v46 = vpop.permute.xlu1 %984 }
 0x545   : > { %v990_v49 = vsel %vm876_vm3, %v985_v46, 0 }
 0x548   : > { %v1096_v42 = vpop.xlane.xlu0 %1095  ;;  %v1101_v51 = vpop.permute.xlu1 %1100 }
 0x549   : > { %2003 = vrcp.f32 %v1096_v42  ;;  %v1106_v54 = vsel %vm876_vm3, %v1101_v51, 0  ;;  %v1714_v42 = vld [vmem:[%s2750_s10] ss:$0 sm:$0xff]  ;;  %v1986_v51 = vld [vmem:[%s2798_s0 + $0x18] sm:$0xff]  }
 0x54b   : > { %v2002_v48 = vpop.eup %2001 }
 0x54c   : > { %v872_v44 = vpop.permute.xlu0 %871  ;;  %v982_v50 = vmul.f32 %v2002_v48, %v1994_v30  ;;  %v1983_v48 = vld [vmem:[%s2798_s0] sm:$0xff]  }
 0x54d   : > { %v878_v45 = vsel %vm876_vm3, %v872_v44, 0  ;;  %v1715_v44 = vld [vmem:[%s2751_s11] ss:$0 sm:$0xff] }
 0x54e   : > { %1786 = vmatpush3.bf16.msra.mxu1 %v878_v45  ;;  %v983_v52 = vpack.c.bf16 %v982_v50, %v982_v50  ;;  %v1985_v50 = vld [vmem:[%s2798_s0 + $0x10] sm:$0xff]  }
 0x54f   : > { %1797 = vmatprep.subr.bf16.mxu1 %v2250_v15 }
 0x551   : > { %1788 = vmatmul.mubr.msk.bf16.vlgmr.msra.gmra.mrb[8].mxu1 %vm811_vm2, %v869_v47 }
 0x552   : > { %1798 = vmatpush3.bf16.msra.mxu1 %v990_v49  ;;  %1799 = vmatprep.mubr.msk.bf16.mxu1 %vm2251_vm1, %v2250_v15  ;;  %v1984_v49 = vld [vmem:[%s2798_s0 + $0x8] sm:$0xff]  }
 0x553   : > { %1809 = vmatprep.subr.bf16.mxu1 %v2250_v15  ;;  %v2004_v53 = vpop.eup %2003 }
 0x554   : > { %v1098_v55 = vmul.f32 %v2004_v53, %v1996_v32 }
 0x556   : > { %v1099_v56 = vpack.c.bf16 %v1098_v55, %v1098_v55 }
 0x559   : > { %1800 = vmatmul.mubr.msk.bf16.vlgmr.msra.gmra.mrb[12].mxu1 %vm811_vm2, %v983_v52  ;;  %v1716_v52 = vld [vmem:[%s2799_s14] ss:$0 sm:$0xff] }
 0x55a   : > { %1810 = vmatpush3.bf16.msra.mxu1 %v1106_v54  ;;  %1811 = vmatprep.mubr.msk.bf16.mxu1 %vm2251_vm1, %v2250_v15 }
 0x55b   : > { %1821 = vmatprep.subr.bf16.mxu1 %v2250_v15 }
 0x561   : > { %1812 = vmatmul.mubr.msk.bf16.vlgmr.msra.gmra.mrb[16].mxu1 %vm811_vm2, %v1099_v56 }
 0x562   : > { %1823 = vmatprep.mubr.msk.bf16.mxu1 %vm2251_vm1, %v2250_v15 }
 0x579   : > { %v1212_v57 = vpop.xlane.xlu1 %1211 }
 0x57a   : > { %2005 = vrcp.f32 %v1212_v57 }
 0x57d   : > { %v1217_v58 = vpop.permute.xlu1 %1216 }
 0x57e   : > { %v1222_v59 = vsel %vm876_vm3, %v1217_v58, 0 }
 0x57f   : > { %1822 = vmatpush3.bf16.msra.mxu1 %v1222_v59 }
 0x580   : > { %1835 = vmatprep.subr.bf16.mxu1 %v2250_v15 }
 0x584   : > { %v2006_v60 = vpop.eup %2005 }
 0x585   : > { %v1214_v61 = vmul.f32 %v2006_v60, %v1998_v37  ;;  %v1981_v37 = vld [vmem:[%s2752_s12] sm:$0xff]  }
 0x587   : > { %v1215_v62 = vpack.c.bf16 %v1214_v61, %v1214_v61 }
 0x589   : > { %1824 = vmatmul.mubr.msk.bf16.vlgmr.msra.gmra.mrb[20].mxu1 %vm811_vm2, %v1215_v62 }
 0x58a   : > { %1839 = vmatprep.mubr.msk.bf16.mxu1 %vm2251_vm1, %v2250_v15  ;;  %1836 = vmatpush3.bf16.msra.mxu1 %v1981_v37 }
 0x58b   : > { %1837 = vmatprep.subr.bf16.mxu1 %v2250_v15 }
 0x624   : > { %v914_v63 = vpop.f32.mrb[8].mxu1 }
 0x625   : > { %920 = vst.msk [vmem:[#allocation2] sm:$0xff] %vm811_vm2, %v914_v63  ;;  %v1789_v1 = vpop.f32.mrb[9].mxu1  ;;  %v1720_v63 = vld [vmem:[%s2801_s30] ss:$0 sm:$0xff] }
 0x626   : > { %v917_v2 = vpop.f32.mrb[10].mxu1 }
 0x627   : > { %v1790_v3 = vpop.f32.mrb[11].mxu1 }
 0x62c   : > { %v1026_v4 = vpop.f32.mrb[12].mxu1 }
 0x62d   : > { %1033 = vrot.lane.b32.xlu0 %v1026_v4, %s2259_s26  ;;  %v1801_v5 = vpop.f32.mrb[13].mxu1  ;;  %s2151_s26 = scalar_lea.vmem %s2694_s29, 128 }
 0x62e   : > { %v1029_v6 = vpop.f32.mrb[14].mxu1  ;;  %p2152_p1 = scmp.ne.s32.totalorder %s2694_s29, %s2151_s26 }
 0x62f   : > { %v1802_v7 = vpop.f32.mrb[15].mxu1 }
 0x630   : > { %p2153_p10 = pnand %p2152_p1, %p2804_p8 }
 0x632   : > { %p2154_p11 = pneg %p2153_p10 }
 0x634   : > { %v1142_v8 = vpop.f32.mrb[16].mxu1 }
 0x635   : > { %1149 = vrot.lane.b32.xlu1 %v1142_v8, %s2260_s6  ;;  %v1813_v9 = vpop.f32.mrb[17].mxu1  ;;  %s2262_s6 = smov [#allocation12]  }
 0x636   : > { %v1145_v10 = vpop.f32.mrb[18].mxu1 }
 0x637   : > { %v1814_v11 = vpop.f32.mrb[19].mxu1 }
 0x65c   : > { %v1258_v14 = vpop.f32.mrb[20].mxu1 }
 0x65d   : > { %1265 = vrot.lane.b32.xlu0 %v1258_v14, %s2261_s18  ;;  %v1825_v16 = vpop.f32.mrb[21].mxu1  ;;  %s2155_s18 = sshll.u32 %s2262_s6, 4  ;;  %s2156_s18 = int_to_ptr.vmem [resolvable:$false] %s2155_s18 }
 0x65e   : > { %v1261_v17 = vpop.f32.mrb[22].mxu1  ;;  %s2157_s14 = scalar_lea.vmem %s2156_s18, 256  ;;  %p2158_p2 = scmp.lt.s32.totalorder %s2694_s29, %s2156_s18 }
 0x65f   : > { %v1826_v18 = vpop.f32.mrb[23].mxu1  ;;  %p2159_p3 = scmp.lt.s32.totalorder %s2157_s14, %s2151_s26 }
 0x661   : > { %p2160_p5 = por %p2159_p3, %p2158_p2 }
 0x663   : > { %p2161_p6 = pnand %p2160_p5, %p2154_p11 }
 0x69f   : > { %v1034_v19 = vpop.permute.xlu0 %1033 }
 0x6a0   : > { %1037 = vst.msk [vmem:[#allocation2] sm:$0xff] %vm1036_vm4, %v1034_v19 }
 0x6a7   : > { %v1150_v20 = vpop.permute.xlu1 %1149 }
 0x6a8   : > { %1153 = vst.msk [vmem:[#allocation2] sm:$0xff] %vm1152_vm5, %v1150_v20 }
 0x6cf   : > { %v1266_v21 = vpop.permute.xlu0 %1265 }
 0x6d0   : > { %1269 = vst.msk [vmem:[#allocation2] sm:$0xff] %vm1268_vm6, %v1266_v21 }
 0x6d7   : > { %v1270_v22 = vld [vmem:[#allocation2] sm:$0xff] }
 0x6d8   : > { %v1275_v23 = vpack.c.bf16 %v1270_v22, %v1270_v22 }
 0x6da   : > { %1832 = vmatmul.mubr.msk.bf16.vlgmr.msra.gmra.mrb[16].mxu0 %vm631_vm0, %v1275_v23 }
 0x6db   : > { %1851 = vmatprep.mubr.msk.bf16.mxu0 %vm2251_vm1, %v2250_v15  ;;  %1844 = vmatpush3.bf16.msra.mxu0 %v1983_v48 }
 0x6dc   : > { %1845 = vmatprep.subr.bf16.mxu0 %v2250_v15 }
 0x6df   : > { %1846 = vmatpush3.bf16.msra.mxu0 %v1984_v49 }
 0x6e0   : > { %1847 = vmatprep.subr.bf16.mxu0 %v2250_v15 }
 0x6e3   : > { %1848 = vmatpush3.bf16.msra.mxu0 %v1985_v50 }
 0x6e4   : > { %1849 = vmatprep.subr.bf16.mxu0 %v2250_v15 }
 0x6e7   : > { %1850 = vmatpush3.bf16.msra.mxu0 %v1986_v51 }
 0x7ad   : > { %v1332_v25 = vpop.f32.mrb[16].mxu0 }
 0x7ae   : > { %v1333_v26 = vadd.f32 %v1710_v24, %v1332_v25  ;;  %v1833_v27 = vpop.f32.mrb[17].mxu0 }
 0x7af   : > { %v1335_v28 = vpop.f32.mrb[18].mxu0 }
 0x7b0   : > { %v2645_v29 = vadd.f32 %v1333_v26, %v2544_v0  ;;  %v1834_v30 = vpop.f32.mrb[19].mxu0  ;;  %v1982_v0 = vld [vmem:[%s2752_s12 + $0x8] sm:$0xff]  }
 0x7b1   : > { %1838 = vmatpush3.bf16.msra.mxu1 %v1982_v0 }
 0x7b2   : > { %v1341_v31 = vsel %vm631_vm0, %v2645_v29, 0.0 }
 0x7b3   : > { %1342 = vadd.xlane.f32.xlu1 %v1341_v31 }
 0x840   : > { %v1343_v32 = vpop.xlane.xlu1 %1342 }
 0x841   : > { %v1344_v33 = vmul.f32 0.03125, %v1343_v32 }
 0x843   : > { %v1345_v34 = vsub.f32 %v2645_v29, %v1344_v33 }
 0x845   : > { %v1346_v35 = vmul.f32 %v1345_v34, %v1345_v34 }
 0x847   : > { %v1347_v36 = vsel %vm631_vm0, %v1346_v35, 0.0 }
 0x848   : > { %1348 = vadd.xlane.f32.xlu0 %v1347_v36 }
 0x8d5   : > { %v1349_v38 = vpop.xlane.xlu0 %1348 }
 0x8d6   : > { %v1350_v39 = vmul.f32 0.03125, %v1349_v38 }
 0x8d8   : > { %v1351_v40 = vadd.f32 1e-05, %v1350_v39 }
 0x8da   : > { %2007 = vrsqrt.f32 %v1351_v40 }
 0x8e4   : > { %v2008_v41 = vpop.eup %2007 }
 0x8e5   : > { %v1353_v43 = vmul.f32 %v2008_v41, %v1345_v34 }
 0x8e7   : > { %v1360_v45 = vmul.f32 %v1714_v42, %v1353_v43 }
 0x8e9   : > { %v1367_v46 = vadd.f32 %v1715_v44, %v1360_v45 }
 0x8eb   : > { %v1372_v47 = vpack.c.bf16 %v1367_v46, %v1367_v46 }
 0x8ed   : > { %1840 = vmatmul.mubr.msk.bf16.vlgmr.msra.gmra.mrb[24].mxu1 %vm631_vm0, %v1372_v47 }
 0x9c0   : > { %v1429_v53 = vpop.f32.mrb[24].mxu1 }
 0x9c1   : > { %v1430_v54 = vadd.f32 %v1716_v52, %v1429_v53  ;;  %v1841_v55 = vpop.f32.mrb[25].mxu1 }
 0x9c2   : > { %v1432_v56 = vpop.f32.mrb[26].mxu1 }
 0x9c3   : > { %v1436_v57 = vmul.f32 0.70710677, %v1430_v54  ;;  %v1842_v58 = vpop.f32.mrb[27].mxu1  ;;  %v1435_v15 = vmul.f32 0.5, %v1430_v54 }
 0x9c5   : > { %2009 = verf.f32 %v1436_v57 }
 0x9cf   : > { %v2010_v59 = vpop.eup %2009 }
 0x9d0   : > { %v1438_v60 = vadd.f32 1.0, %v2010_v59 }
 0x9d2   : > { %v1439_v61 = vmul.f32 %v1438_v60, %v1435_v15 }
 0x9d4   : > { %v1448_v62 = vpack.c.bf16 %v1439_v61, %v1439_v61 }
 0x9d6   : > { %1852 = vmatmul.mubr.msk.bf16.vlgmr.msra.gmra.mrb[20].mxu0 %vm1480_vm7, %v1448_v62 }
 0xaa9   : > { %v1518_v1 = vpop.f32.mrb[20].mxu0 }
 0xaaa   : > { %v1519_v2 = vadd.f32 %v1720_v63, %v1518_v1  ;;  %v1853_v3 = vpop.f32.mrb[21].mxu0 }
 0xaab   : > { %v1521_v4 = vpop.f32.mrb[22].mxu0 }
 0xaac   : > { %v1524_v5 = vadd.f32 %v1519_v2, %v2645_v29  ;;  %v1854_v6 = vpop.f32.mrb[23].mxu0 }
 0xaae   : > { %1525 = vst.msk [vmem:[%s614_s17] sm:$0xff] %vm631_vm0, %v1524_v5 }
 0xaaf   : > { %2164 = shalt.err (!%p2161_p6)
}
 0xab0   : > { %s2165_s21 = scalar_lea.hbm %s2692_s25, 128  ;;  %s2169_s16 = scalar_lea.hbm %s2803_s13, 256 }
 0xab1   : > { %p2166_p7 = scmp.ne.s32.totalorder %s2692_s25, %s2165_s21  ;;  %p2170_p0 = scmp.lt.u32.totalorder %s2692_s25, %s2803_s13 }
 0xab2   : > { %p2171_p4 = scmp.lt.u32.totalorder %s2169_s16, %s2165_s21  ;;  %p2173_p1 = scmp.lt.u32.totalorder %s2165_s21, %s2692_s25 }
 0xab3   : > { %p2167_p9 = pnand %p2166_p7, %p2804_p8 }
 0xab4   : > { %p2172_p13 = por %p2171_p4, %p2170_p0 }
 0xab5   : > { %p2168_p12 = pneg %p2167_p9 }
 0xab6   : > { %p2174_p10 = por %p2173_p1, %p2172_p13 }
 0xab8   : > { %p2175_p11 = pnand %p2174_p10, %p2168_p12 }
 0xaba   : > { %2178 = shalt.err (!%p2175_p11)
}
 0xabb   : > { %1875 = dma.vmem_to_hbm [thread:$0]  (%p2804_p8), %s2694_s29, 128, %s2692_s25, %s1527_s24  }
 0xabc PF: > { %s2805_s19 = sld [smem:[#allocation21_spill]]  ;;  %s2806_s17 = sld [smem:[#allocation17_spill]] }
 0xabd   : > { %s2807_s20 = sld [smem:[#allocation24_spill]] }
 0xac2   : > { %p1907_p2 = scmp.ge.s32.totalorder %s2805_s19, 2  ;;  %s1553_s28 = sand.u32 1, %s2806_s17  }
 0xac3   : > { %p2808_p3 = scmp.ne.s32.totalorder %s2807_s20, 0  ;;  %s1554_s26 = scalar_lea.sflag [#allocation5], %s1553_s28 }
 0xac5   : > { %p1894_p5 = pnand %p1907_p2, %p2808_p3 }
 0xac7   : > { %2216 = dma.done.wait (!%p1894_p5), %s1554_s26, 128  }
 0xac8   : > { %2218 = vsyncadd (!%p1894_p5), %s1554_s26, 4294967168  ;;  %s32_s26 = sadd.s32 1, %s2805_s19   ;;  %s2809_s21 = sld [smem:[#allocation18_spill]] }
 0xac9   : > { %p29_p6 = scmp.ge.s32.totalorder %s32_s26, 4   ;;  %s2810_s22 = sld [smem:[#allocation19_spill]] }
 0xaca   : > { %s2811_s23 = sld [smem:[#allocation25_spill]]  ;;  %s2812_s24 = sld [smem:[#allocation20_spill]] }
 0xacb   : > { %s2813_s25 = sld [smem:[#allocation22_spill]]  ;;  %31 = sbr.rel (!%p29_p6) target bundleno = 14 (0xe), region = 143 }
 0xad2   :  { %1559 = vsyncpa [#allocation4], 1 }
 0xad3   :  { %1561 = vsyncpa [#allocation4 + $0x1], 1 }
 0xad4   :  { %1562 = vsyncpa [#allocation7], 1 }
 0xad5   :  { %1563 = vsyncpa [#allocation10], 1 }
 0xad6   :  { %1564 = vsyncpa [#allocation5], 1 }
 0xad7   :  { %1566 = vsyncpa [#allocation5 + $0x1], 1 }

</bundles_post_ra>
